<compile_context>
chip_gen: v6e
topology: v6e:2x2x1
jax: 0.10.0
libtpu: 0.0.40
codegen_flags: <defaults>
</compile_context>

<pallas_src>
import functools
import math

import jax
import jax.numpy as jnp
from jax.experimental import pallas as pl
from jax.experimental.pallas import tpu as pltpu


# --------------------------------------------------------------------------------------
# Pallas kernel
# --------------------------------------------------------------------------------------
def _recon_update_kernel(fh_r_ref, fh_i_ref, fwt_r_ref, fwt_i_ref,
                         mask_ref, k0_ref, minus_ref, mul_ref, o_ref, *, rho):
    """One grid step = one (H, W) complex slice (one batch/shot element).

    fh_*  : (H, H)      centered ortho DFT matrix for the row axis (real / imag)
    fwt_* : (W, W)      centered ortho DFT matrix for the col axis, pre-transposed
    mask  : (1, H, W)   sampling mask (0/1)
    k0, minus, mul, out : (1, 2, H, W)  complex as [real, imag] planes
    """
    f32 = jnp.float32

    def mm(a, b):
        # Full-precision f32 matmul on the MXU.
        return jnp.dot(a, b, preferred_element_type=f32,
                       precision=jax.lax.Precision.HIGHEST)

    fh_r = fh_r_ref[...]
    fh_i = fh_i_ref[...]
    fwt_r = fwt_r_ref[...]
    fwt_i = fwt_i_ref[...]

    # sub = minus_output - mul_output                     (complex, image domain)
    sub_r = minus_ref[0, 0] - mul_ref[0, 0]
    sub_i = minus_ref[0, 1] - mul_ref[0, 1]

    # number = fft2c(sub) = Fh @ sub @ Fw^T               (complex matmuls -> 8 real matmuls)
    t_r = mm(fh_r, sub_r) - mm(fh_i, sub_i)
    t_i = mm(fh_r, sub_i) + mm(fh_i, sub_r)
    n_r = mm(t_r, fwt_r) - mm(t_i, fwt_i)
    n_i = mm(t_r, fwt_i) + mm(t_i, fwt_r)

    # rhs = K_mulShot_sigCoil + rho * number
    rhs_r = k0_ref[0, 0] + rho * n_r
    rhs_i = k0_ref[0, 1] + rho * n_i

    # data consistency (exact diagonal solve): K = rhs / (mask + rho)
    inv_den = 1.0 / (mask_ref[0] + rho)
    k_r = rhs_r * inv_den
    k_i = rhs_i * inv_den

    # I_out = ifft2c(K) = conj(Fh) @ K @ conj(Fw)^T
    u_r = mm(fh_r, k_r) + mm(fh_i, k_i)
    u_i = mm(fh_r, k_i) - mm(fh_i, k_r)
    o_ref[0, 0] = mm(u_r, fwt_r) + mm(u_i, fwt_i)
    o_ref[0, 1] = mm(u_i, fwt_r) - mm(u_r, fwt_i)


# --------------------------------------------------------------------------------------
# Wrapper
# --------------------------------------------------------------------------------------
def _centered_dft_matrix(n):
    """Matrix M such that M @ x == fftshift(fft(ifftshift(x), norm='ortho')) for a vector x."""
    eye = jnp.eye(n, dtype=jnp.complex64)
    return jnp.fft.fftshift(
        jnp.fft.fft(jnp.fft.ifftshift(eye, axes=(0,)), axis=0, norm="ortho"),
        axes=(0,))


def reconstruction_update_layer(K_mulShot_sigCoil, minus_output, mul_output, I, csm, mask, rho):
    """Mirrors ReconstructionUpdateLayer.forward.  Complex inputs, complex output."""
    del csm, I  # not needed by the exact closed-form data consistency (see header TODO).

    k0 = jnp.asarray(K_mulShot_sigCoil, jnp.complex64)
    minus = jnp.asarray(minus_output, jnp.complex64)
    mul = jnp.asarray(mul_output, jnp.complex64)

    lead = k0.shape[:-2]
    H, W = k0.shape[-2:]
    B = int(math.prod(lead)) if lead else 1

    def as_ri(x):  # (..., H, W) complex -> (B, 2, H, W) f32
        x = x.reshape(B, H, W)
        return jnp.stack([jnp.real(x), jnp.imag(x)], axis=1).astype(jnp.float32)

    k0_ri = as_ri(k0)
    minus_ri = as_ri(minus)
    mul_ri = as_ri(mul)

    mask_f = jnp.real(jnp.asarray(mask)).astype(jnp.float32)
    mask_f = jnp.broadcast_to(mask_f, lead + (H, W)).reshape(B, H, W)

    # Centered orthonormal DFT matrices (constants, resident in VMEM).
    fh = _centered_dft_matrix(H)
    fw = _centered_dft_matrix(W)
    fh_r, fh_i = jnp.real(fh), jnp.imag(fh)
    fwt_r, fwt_i = jnp.real(fw).T, jnp.imag(fw).T

    kernel = functools.partial(_recon_update_kernel, rho=float(rho))

    out = pl.pallas_call(
        kernel,
        out_shape=jax.ShapeDtypeStruct((B, 2, H, W), jnp.float32),
        grid_spec=pltpu.PrefetchScalarGridSpec(
            num_scalar_prefetch=0,
            grid=(B,),                                        # one slice per grid step
            in_specs=[
                pl.BlockSpec((H, H), lambda b: (0, 0)),       # DFT matrices: resident
                pl.BlockSpec((H, H), lambda b: (0, 0)),
                pl.BlockSpec((W, W), lambda b: (0, 0)),
                pl.BlockSpec((W, W), lambda b: (0, 0)),
                pl.BlockSpec((1, H, W), lambda b: (b, 0, 0)),
                pl.BlockSpec((1, 2, H, W), lambda b: (b, 0, 0, 0)),
                pl.BlockSpec((1, 2, H, W), lambda b: (b, 0, 0, 0)),
                pl.BlockSpec((1, 2, H, W), lambda b: (b, 0, 0, 0)),
            ],
            out_specs=pl.BlockSpec((1, 2, H, W), lambda b: (b, 0, 0, 0)),
        ),
        compiler_params=pltpu.CompilerParams(
            dimension_semantics=("parallel",)),               # megacore over batch/shots
    )(fh_r, fh_i, fwt_r, fwt_i, mask_f, k0_ri, minus_ri, mul_ri)

    out_c = (out[:, 0] + 1j * out[:, 1]).astype(jnp.complex64)
    return out_c.reshape(lead + (H, W))


# --------------------------------------------------------------------------------------
# Pure-JAX reference (same assumed fft2c / ifft2c / dc semantics)
# --------------------------------------------------------------------------------------
def _fft2c(x):
    return jnp.fft.fftshift(
        jnp.fft.fft2(jnp.fft.ifftshift(x, axes=(-2, -1)), norm="ortho"),
        axes=(-2, -1))


def _ifft2c(x):
    return jnp.fft.fftshift(
        jnp.fft.ifft2(jnp.fft.ifftshift(x, axes=(-2, -1)), norm="ortho"),
        axes=(-2, -1))


def _ref_forward(K_mulShot_sigCoil, minus_output, mul_output, I, csm, mask, rho):
    del csm, I
    sub = minus_output - mul_output
    number = _fft2c(sub)
    rhs = K_mulShot_sigCoil + rho * number
    K = rhs / (mask + rho)          # closed-form diagonal data consistency
    return _ifft2c(K)


# --------------------------------------------------------------------------------------
# Demo / self-check
# --------------------------------------------------------------------------------------
if __name__ == "__main__":
    B, n_coil, H, W = 2, 4, 16, 16
    rho = 0.5

    key = jax.random.PRNGKey(0)
    ks = jax.random.split(key, 11)

    def cplx(kr, ki, shape):
        return (jax.random.normal(kr, shape, dtype=jnp.float32)
                + 1j * jax.random.normal(ki, shape, dtype=jnp.float32)).astype(jnp.complex64)

    k0 = cplx(ks[0], ks[1], (B, H, W))          # K_mulShot_sigCoil (k-space)
    minus = cplx(ks[2], ks[3], (B, H, W))       # minus_output (image)
    mul = cplx(ks[4], ks[5], (B, H, W))         # mul_output (image)
    I_img = cplx(ks[6], ks[7], (B, H, W))       # previous image estimate
    csm = cplx(ks[8], ks[9], (B, n_coil, H, W))  # coil maps (unused by closed-form dc)
    mask = (jax.random.uniform(ks[10], (H, W)) > 0.5).astype(jnp.float32)

    out = reconstruction_update_layer(k0, minus, mul, I_img, csm, mask, rho)
    out = jax.block_until_ready(out)

    ref = _ref_forward(k0, minus, mul, I_img, csm,
                       jnp.broadcast_to(mask, (B, H, W)), rho)

    assert out.shape == (B, H, W), f"bad output shape {out.shape}"
    err = float(jnp.max(jnp.abs(out - ref)))
    assert err < 1e-3, f"mismatch vs JAX reference: max abs err = {err}"

    print("KERNEL_OK")
</pallas_src>

<mosaic_0001>
module attributes {stable_mosaic.version = 11 : i64} {
  func.func @_recon_update_kernel(%arg0: i32, %arg1: memref<16x16xf32, #tpu.memory_space<vmem>>, %arg2: memref<16x16xf32, #tpu.memory_space<vmem>>, %arg3: memref<16x16xf32, #tpu.memory_space<vmem>>, %arg4: memref<16x16xf32, #tpu.memory_space<vmem>>, %arg5: memref<1x16x16xf32, #tpu.memory_space<vmem>>, %arg6: memref<1x2x16x16xf32, #tpu.memory_space<vmem>>, %arg7: memref<1x2x16x16xf32, #tpu.memory_space<vmem>>, %arg8: memref<1x2x16x16xf32, #tpu.memory_space<vmem>>, %arg9: memref<1x2x16x16xf32, #tpu.memory_space<vmem>>) attributes {dimension_semantics = [#tpu.dimension_semantics<parallel>], iteration_bounds = array<i64: 2>, scalar_prefetch = 0 : i64, scratch_operands = 0 : i64, tpu.core_type = #tpu.core_type<tc>, window_params = [{pipeline_mode = #tpu.pipeline_mode<synchronous>, transform_indices = @transform_0, window_bounds = array<i64: 16, 16>}, {pipeline_mode = #tpu.pipeline_mode<synchronous>, transform_indices = @transform_1, window_bounds = array<i64: 16, 16>}, {pipeline_mode = #tpu.pipeline_mode<synchronous>, transform_indices = @transform_2, window_bounds = array<i64: 16, 16>}, {pipeline_mode = #tpu.pipeline_mode<synchronous>, transform_indices = @transform_3, window_bounds = array<i64: 16, 16>}, {transform_indices = @transform_4, window_bounds = array<i64: 1, 16, 16>}, {transform_indices = @transform_5, window_bounds = array<i64: 1, 2, 16, 16>}, {transform_indices = @transform_6, window_bounds = array<i64: 1, 2, 16, 16>}, {transform_indices = @transform_7, window_bounds = array<i64: 1, 2, 16, 16>}, {transform_indices = @transform_8, window_bounds = array<i64: 1, 2, 16, 16>}]} {
    %c0 = arith.constant 0 : index
    %c0_0 = arith.constant 0 : index
    %0 = vector.load %arg1[%c0, %c0_0] : memref<16x16xf32, #tpu.memory_space<vmem>>, vector<16x16xf32>
    %c0_1 = arith.constant 0 : index
    %c0_2 = arith.constant 0 : index
    %1 = vector.load %arg2[%c0_1, %c0_2] : memref<16x16xf32, #tpu.memory_space<vmem>>, vector<16x16xf32>
    %c0_3 = arith.constant 0 : index
    %c0_4 = arith.constant 0 : index
    %2 = vector.load %arg3[%c0_3, %c0_4] : memref<16x16xf32, #tpu.memory_space<vmem>>, vector<16x16xf32>
    %c0_5 = arith.constant 0 : index
    %c0_6 = arith.constant 0 : index
    %3 = vector.load %arg4[%c0_5, %c0_6] : memref<16x16xf32, #tpu.memory_space<vmem>>, vector<16x16xf32>
    %c0_7 = arith.constant 0 : index
    %c0_8 = arith.constant 0 : index
    %c0_9 = arith.constant 0 : index
    %c0_10 = arith.constant 0 : index
    %4 = vector.load %arg7[%c0_7, %c0_8, %c0_9, %c0_10] : memref<1x2x16x16xf32, #tpu.memory_space<vmem>>, vector<1x1x16x16xf32>
    %5 = vector.shape_cast %4 : vector<1x1x16x16xf32> to vector<16x16xf32>
    %c0_11 = arith.constant 0 : index
    %c0_12 = arith.constant 0 : index
    %c0_13 = arith.constant 0 : index
    %c0_14 = arith.constant 0 : index
    %6 = vector.load %arg8[%c0_11, %c0_12, %c0_13, %c0_14] : memref<1x2x16x16xf32, #tpu.memory_space<vmem>>, vector<1x1x16x16xf32>
    %7 = vector.shape_cast %6 : vector<1x1x16x16xf32> to vector<16x16xf32>
    %8 = arith.subf %5, %7 : vector<16x16xf32>
    %c0_15 = arith.constant 0 : index
    %c1 = arith.constant 1 : index
    %c0_16 = arith.constant 0 : index
    %c0_17 = arith.constant 0 : index
    %9 = vector.load %arg7[%c0_15, %c1, %c0_16, %c0_17] : memref<1x2x16x16xf32, #tpu.memory_space<vmem>>, vector<1x1x16x16xf32>
    %10 = vector.shape_cast %9 : vector<1x1x16x16xf32> to vector<16x16xf32>
    %c0_18 = arith.constant 0 : index
    %c1_19 = arith.constant 1 : index
    %c0_20 = arith.constant 0 : index
    %c0_21 = arith.constant 0 : index
    %11 = vector.load %arg8[%c0_18, %c1_19, %c0_20, %c0_21] : memref<1x2x16x16xf32, #tpu.memory_space<vmem>>, vector<1x1x16x16xf32>
    %12 = vector.shape_cast %11 : vector<1x1x16x16xf32> to vector<16x16xf32>
    %13 = arith.subf %10, %12 : vector<16x16xf32>
    %cst = arith.constant dense<0.000000e+00> : vector<16x16xf32>
    %14 = tpu.matmul %0, %8, %cst {dimension_numbers = #tpu.dot_dimension_numbers<[1], [0], [0], [1], [0, 0, 1, 1], [], []>, precision = #tpu.contract_precision<fp32>} : vector<16x16xf32>, vector<16x16xf32>, vector<16x16xf32> -> vector<16x16xf32>
    %cst_22 = arith.constant dense<0.000000e+00> : vector<16x16xf32>
    %15 = tpu.matmul %1, %13, %cst_22 {dimension_numbers = #tpu.dot_dimension_numbers<[1], [0], [0], [1], [0, 0, 1, 1], [], []>, precision = #tpu.contract_precision<fp32>} : vector<16x16xf32>, vector<16x16xf32>, vector<16x16xf32> -> vector<16x16xf32>
    %16 = arith.subf %14, %15 : vector<16x16xf32>
    %cst_23 = arith.constant dense<0.000000e+00> : vector<16x16xf32>
    %17 = tpu.matmul %0, %13, %cst_23 {dimension_numbers = #tpu.dot_dimension_numbers<[1], [0], [0], [1], [0, 0, 1, 1], [], []>, precision = #tpu.contract_precision<fp32>} : vector<16x16xf32>, vector<16x16xf32>, vector<16x16xf32> -> vector<16x16xf32>
    %cst_24 = arith.constant dense<0.000000e+00> : vector<16x16xf32>
    %18 = tpu.matmul %1, %8, %cst_24 {dimension_numbers = #tpu.dot_dimension_numbers<[1], [0], [0], [1], [0, 0, 1, 1], [], []>, precision = #tpu.contract_precision<fp32>} : vector<16x16xf32>, vector<16x16xf32>, vector<16x16xf32> -> vector<16x16xf32>
    %19 = arith.addf %17, %18 : vector<16x16xf32>
    %cst_25 = arith.constant dense<0.000000e+00> : vector<16x16xf32>
    %20 = tpu.matmul %16, %2, %cst_25 {dimension_numbers = #tpu.dot_dimension_numbers<[1], [0], [0], [1], [0, 0, 1, 1], [], []>, precision = #tpu.contract_precision<fp32>} : vector<16x16xf32>, vector<16x16xf32>, vector<16x16xf32> -> vector<16x16xf32>
    %cst_26 = arith.constant dense<0.000000e+00> : vector<16x16xf32>
    %21 = tpu.matmul %19, %3, %cst_26 {dimension_numbers = #tpu.dot_dimension_numbers<[1], [0], [0], [1], [0, 0, 1, 1], [], []>, precision = #tpu.contract_precision<fp32>} : vector<16x16xf32>, vector<16x16xf32>, vector<16x16xf32> -> vector<16x16xf32>
    %22 = arith.subf %20, %21 : vector<16x16xf32>
    %cst_27 = arith.constant dense<0.000000e+00> : vector<16x16xf32>
    %23 = tpu.matmul %16, %3, %cst_27 {dimension_numbers = #tpu.dot_dimension_numbers<[1], [0], [0], [1], [0, 0, 1, 1], [], []>, precision = #tpu.contract_precision<fp32>} : vector<16x16xf32>, vector<16x16xf32>, vector<16x16xf32> -> vector<16x16xf32>
    %cst_28 = arith.constant dense<0.000000e+00> : vector<16x16xf32>
    %24 = tpu.matmul %19, %2, %cst_28 {dimension_numbers = #tpu.dot_dimension_numbers<[1], [0], [0], [1], [0, 0, 1, 1], [], []>, precision = #tpu.contract_precision<fp32>} : vector<16x16xf32>, vector<16x16xf32>, vector<16x16xf32> -> vector<16x16xf32>
    %25 = arith.addf %23, %24 : vector<16x16xf32>
    %c0_29 = arith.constant 0 : index
    %c0_30 = arith.constant 0 : index
    %c0_31 = arith.constant 0 : index
    %c0_32 = arith.constant 0 : index
    %26 = vector.load %arg6[%c0_29, %c0_30, %c0_31, %c0_32] : memref<1x2x16x16xf32, #tpu.memory_space<vmem>>, vector<1x1x16x16xf32>
    %27 = vector.shape_cast %26 : vector<1x1x16x16xf32> to vector<16x16xf32>
    %cst_33 = arith.constant 5.000000e-01 : f32
    %28 = vector.broadcast %cst_33 : f32 to vector<16x16xf32>
    %29 = arith.mulf %28, %22 : vector<16x16xf32>
    %30 = arith.addf %27, %29 : vector<16x16xf32>
    %c0_34 = arith.constant 0 : index
    %c1_35 = arith.constant 1 : index
    %c0_36 = arith.constant 0 : index
    %c0_37 = arith.constant 0 : index
    %31 = vector.load %arg6[%c0_34, %c1_35, %c0_36, %c0_37] : memref<1x2x16x16xf32, #tpu.memory_space<vmem>>, vector<1x1x16x16xf32>
    %32 = vector.shape_cast %31 : vector<1x1x16x16xf32> to vector<16x16xf32>
    %cst_38 = arith.constant 5.000000e-01 : f32
    %33 = vector.broadcast %cst_38 : f32 to vector<16x16xf32>
    %34 = arith.mulf %33, %25 : vector<16x16xf32>
    %35 = arith.addf %32, %34 : vector<16x16xf32>
    %c0_39 = arith.constant 0 : index
    %c0_40 = arith.constant 0 : index
    %c0_41 = arith.constant 0 : index
    %36 = vector.load %arg5[%c0_39, %c0_40, %c0_41] : memref<1x16x16xf32, #tpu.memory_space<vmem>>, vector<1x16x16xf32>
    %37 = vector.shape_cast %36 : vector<1x16x16xf32> to vector<16x16xf32>
    %cst_42 = arith.constant 5.000000e-01 : f32
    %38 = vector.broadcast %cst_42 : f32 to vector<16x16xf32>
    %39 = arith.addf %37, %38 : vector<16x16xf32>
    %cst_43 = arith.constant 1.000000e+00 : f32
    %40 = vector.broadcast %cst_43 : f32 to vector<16x16xf32>
    %41 = arith.divf %40, %39 : vector<16x16xf32>
    %42 = arith.mulf %30, %41 : vector<16x16xf32>
    %43 = arith.mulf %35, %41 : vector<16x16xf32>
    %cst_44 = arith.constant dense<0.000000e+00> : vector<16x16xf32>
    %44 = tpu.matmul %0, %42, %cst_44 {dimension_numbers = #tpu.dot_dimension_numbers<[1], [0], [0], [1], [0, 0, 1, 1], [], []>, precision = #tpu.contract_precision<fp32>} : vector<16x16xf32>, vector<16x16xf32>, vector<16x16xf32> -> vector<16x16xf32>
    %cst_45 = arith.constant dense<0.000000e+00> : vector<16x16xf32>
    %45 = tpu.matmul %1, %43, %cst_45 {dimension_numbers = #tpu.dot_dimension_numbers<[1], [0], [0], [1], [0, 0, 1, 1], [], []>, precision = #tpu.contract_precision<fp32>} : vector<16x16xf32>, vector<16x16xf32>, vector<16x16xf32> -> vector<16x16xf32>
    %46 = arith.addf %44, %45 : vector<16x16xf32>
    %cst_46 = arith.constant dense<0.000000e+00> : vector<16x16xf32>
    %47 = tpu.matmul %0, %43, %cst_46 {dimension_numbers = #tpu.dot_dimension_numbers<[1], [0], [0], [1], [0, 0, 1, 1], [], []>, precision = #tpu.contract_precision<fp32>} : vector<16x16xf32>, vector<16x16xf32>, vector<16x16xf32> -> vector<16x16xf32>
    %cst_47 = arith.constant dense<0.000000e+00> : vector<16x16xf32>
    %48 = tpu.matmul %1, %42, %cst_47 {dimension_numbers = #tpu.dot_dimension_numbers<[1], [0], [0], [1], [0, 0, 1, 1], [], []>, precision = #tpu.contract_precision<fp32>} : vector<16x16xf32>, vector<16x16xf32>, vector<16x16xf32> -> vector<16x16xf32>
    %49 = arith.subf %47, %48 : vector<16x16xf32>
    %cst_48 = arith.constant dense<0.000000e+00> : vector<16x16xf32>
    %50 = tpu.matmul %46, %2, %cst_48 {dimension_numbers = #tpu.dot_dimension_numbers<[1], [0], [0], [1], [0, 0, 1, 1], [], []>, precision = #tpu.contract_precision<fp32>} : vector<16x16xf32>, vector<16x16xf32>, vector<16x16xf32> -> vector<16x16xf32>
    %cst_49 = arith.constant dense<0.000000e+00> : vector<16x16xf32>
    %51 = tpu.matmul %49, %3, %cst_49 {dimension_numbers = #tpu.dot_dimension_numbers<[1], [0], [0], [1], [0, 0, 1, 1], [], []>, precision = #tpu.contract_precision<fp32>} : vector<16x16xf32>, vector<16x16xf32>, vector<16x16xf32> -> vector<16x16xf32>
    %52 = arith.addf %50, %51 : vector<16x16xf32>
    %c0_50 = arith.constant 0 : index
    %c0_51 = arith.constant 0 : index
    %c0_52 = arith.constant 0 : index
    %c0_53 = arith.constant 0 : index
    %53 = vector.load %arg9[%c0_50, %c0_51, %c0_52, %c0_53] : memref<1x2x16x16xf32, #tpu.memory_space<vmem>>, vector<1x1x16x16xf32>
    %54 = vector.shape_cast %53 : vector<1x1x16x16xf32> to vector<16x16xf32>
    %55 = vector.shape_cast %52 : vector<16x16xf32> to vector<1x1x16x16xf32>
    tpu.vector_store %arg9[%c0_50, %c0_51, %c0_52, %c0_53], %55 {strides = array<i32>} : memref<1x2x16x16xf32, #tpu.memory_space<vmem>>, vector<1x1x16x16xf32>,
    %cst_54 = arith.constant dense<0.000000e+00> : vector<16x16xf32>
    %56 = tpu.matmul %49, %2, %cst_54 {dimension_numbers = #tpu.dot_dimension_numbers<[1], [0], [0], [1], [0, 0, 1, 1], [], []>, precision = #tpu.contract_precision<fp32>} : vector<16x16xf32>, vector<16x16xf32>, vector<16x16xf32> -> vector<16x16xf32>
    %cst_55 = arith.constant dense<0.000000e+00> : vector<16x16xf32>
    %57 = tpu.matmul %46, %3, %cst_55 {dimension_numbers = #tpu.dot_dimension_numbers<[1], [0], [0], [1], [0, 0, 1, 1], [], []>, precision = #tpu.contract_precision<fp32>} : vector<16x16xf32>, vector<16x16xf32>, vector<16x16xf32> -> vector<16x16xf32>
    %58 = arith.subf %56, %57 : vector<16x16xf32>
    %c0_56 = arith.constant 0 : index
    %c1_57 = arith.constant 1 : index
    %c0_58 = arith.constant 0 : index
    %c0_59 = arith.constant 0 : index
    %59 = vector.load %arg9[%c0_56, %c1_57, %c0_58, %c0_59] : memref<1x2x16x16xf32, #tpu.memory_space<vmem>>, vector<1x1x16x16xf32>
    %60 = vector.shape_cast %59 : vector<1x1x16x16xf32> to vector<16x16xf32>
    %61 = vector.shape_cast %58 : vector<16x16xf32> to vector<1x1x16x16xf32>
    tpu.vector_store %arg9[%c0_56, %c1_57, %c0_58, %c0_59], %61 {strides = array<i32>} : memref<1x2x16x16xf32, #tpu.memory_space<vmem>>, vector<1x1x16x16xf32>,
    return
  }
  func.func @transform_0(%arg0: i32) -> (i32, i32) {
    %c0_i32 = arith.constant 0 : i32
    %c0_i32_0 = arith.constant 0 : i32
    %c0_i32_1 = arith.constant 0 : i32
    return %c0_i32, %c0_i32_0 : i32, i32
  }
  func.func @transform_1(%arg0: i32) -> (i32, i32) {
    %c0_i32 = arith.constant 0 : i32
    %c0_i32_0 = arith.constant 0 : i32
    %c0_i32_1 = arith.constant 0 : i32
    return %c0_i32, %c0_i32_0 : i32, i32
  }
  func.func @transform_2(%arg0: i32) -> (i32, i32) {
    %c0_i32 = arith.constant 0 : i32
    %c0_i32_0 = arith.constant 0 : i32
    %c0_i32_1 = arith.constant 0 : i32
    return %c0_i32, %c0_i32_0 : i32, i32
  }
  func.func @transform_3(%arg0: i32) -> (i32, i32) {
    %c0_i32 = arith.constant 0 : i32
    %c0_i32_0 = arith.constant 0 : i32
    %c0_i32_1 = arith.constant 0 : i32
    return %c0_i32, %c0_i32_0 : i32, i32
  }
  func.func @transform_4(%arg0: i32) -> (i32, i32, i32) {
    %c0_i32 = arith.constant 0 : i32
    %c0_i32_0 = arith.constant 0 : i32
    %c0_i32_1 = arith.constant 0 : i32
    return %arg0, %c0_i32, %c0_i32_0 : i32, i32, i32
  }
  func.func @transform_5(%arg0: i32) -> (i32, i32, i32, i32) {
    %c0_i32 = arith.constant 0 : i32
    %c0_i32_0 = arith.constant 0 : i32
    %c0_i32_1 = arith.constant 0 : i32
    %c0_i32_2 = arith.constant 0 : i32
    return %arg0, %c0_i32, %c0_i32_0, %c0_i32_1 : i32, i32, i32, i32
  }
  func.func @transform_6(%arg0: i32) -> (i32, i32, i32, i32) {
    %c0_i32 = arith.constant 0 : i32
    %c0_i32_0 = arith.constant 0 : i32
    %c0_i32_1 = arith.constant 0 : i32
    %c0_i32_2 = arith.constant 0 : i32
    return %arg0, %c0_i32, %c0_i32_0, %c0_i32_1 : i32, i32, i32, i32
  }
  func.func @transform_7(%arg0: i32) -> (i32, i32, i32, i32) {
    %c0_i32 = arith.constant 0 : i32
    %c0_i32_0 = arith.constant 0 : i32
    %c0_i32_1 = arith.constant 0 : i32
    %c0_i32_2 = arith.constant 0 : i32
    return %arg0, %c0_i32, %c0_i32_0, %c0_i32_1 : i32, i32, i32, i32
  }
  func.func @transform_8(%arg0: i32) -> (i32, i32, i32, i32) {
    %c0_i32 = arith.constant 0 : i32
    %c0_i32_0 = arith.constant 0 : i32
    %c0_i32_1 = arith.constant 0 : i32
    %c0_i32_2 = arith.constant 0 : i32
    return %arg0, %c0_i32, %c0_i32_0, %c0_i32_1 : i32, i32, i32, i32
  }
}

</mosaic_0001>

<bundles_post_ra>
// kernel: tpu_custom_call.1
= control target key start
LH: loop header
LB: loop body
LE: loop exit
PB: predicated region body
PF: predicated region fallthrough
CT: control target
= control target key end

     0   :  { %s11614_s0 = inlined_call_operand.hbm [shape: f32[16,16], index: 0, kind: input, shape index: {}]   ;;  %s11615_s1 = inlined_call_operand.hbm [shape: f32[16,16], index: 1, kind: input, shape index: {}]   ;;  %s11616_s2 = inlined_call_operand.hbm [shape: f32[16,16], index: 2, kind: input, shape index: {}]   ;;  %s11617_s3 = inlined_call_operand.hbm [shape: f32[16,16], index: 3, kind: input, shape index: {}]   ;;  %s11618_s4 = inlined_call_operand.hbm [shape: f32[2,16,16], index: 4, kind: input, shape index: {}]   ;;  %s11619_s5 = inlined_call_operand.hbm [shape: f32[2,2,16,16], index: 5, kind: input, shape index: {}]   ;;  %s11620_s6 = inlined_call_operand.hbm [shape: f32[2,2,16,16], index: 6, kind: input, shape index: {}]   ;;  %s11621_s7 = inlined_call_operand.hbm [shape: f32[2,2,16,16], index: 7, kind: input, shape index: {}]   ;;  %s11622_s8 = inlined_call_operand.hbm [shape: f32[2,2,16,16], index: 8, kind: output, shape index: {}]  }
   0x1   :  { %11677 = sst [smem:[#allocation44_spill]] %s11614_s0 }
   0x2   :  { %11678 = sst [smem:[#allocation45_spill]] %s11618_s4 }
   0x3   :  { %11679 = sst [smem:[#allocation46_spill]] %s11622_s8 }
   0x4   :  { %13 = vsyncpa [#allocation3], 0 }
   0x5   :  { %14 = vsyncpa [#allocation6], 0 }
   0x6   :  { %15 = vsyncpa [#allocation9], 0 }
   0x7   :  { %16 = vsyncpa [#allocation4], 0 }
   0x8   :  { %18 = vsyncpa [#allocation4 + $0x1], 0  ;;  %s10370_s27 = smov 0   ;;  %s10372_s28 = smov 0  }
   0x9   :  { %s10374_s29 = smov 0   ;;  %s10376_s30 = smov 0  }
   0xa LB: > { %11680 = sst [smem:[#allocation20_spill]] %s10298_s27  ;;  %s10391_s9 = sadd.s32 4294967295, %s10310_s30   ;;  %s10310_s30 = sphi %s10376_s30, %s11753_s30   ;;  %s10306_s29 = sphi %s10374_s29, %s11755_s29   ;;  %s10302_s28 = sphi %s10372_s28, %s11757_s28   ;;  %s10298_s27 = sphi %s10370_s27, %s11756_s27  }
   0xb   : > { %11681 = sst [smem:[#allocation21_spill]] %s10306_s29  ;;  %s8805_s10 = sadd.s32 4294967294, %s10310_s30  }
   0xc   : > { %11682 = sst [smem:[#allocation22_spill]] %s10310_s30  ;;  %p128_p0 = scmp.ne.s32.totalorder %s10302_s28, %s10298_s27 }
   0xd   : > { %p11630_p1 = scmp.eq.s32.totalorder %s10391_s9, 0  ;;  %p230_p2 = scmp.eq.s32.totalorder %s10391_s9, 1 }
   0xe   : > { %p236_p3 = scmp.eq.s32.totalorder %s8805_s10, 1  ;;  %p8806_p5 = scmp.ge.s32.totalorder %s10310_s30, 1 }
   0xf   : > { %p10400_p4 = por %p11630_p1, %p128_p0  ;;  %p243_p7 = scmp.lt.s32.totalorder %s10310_s30, 3 }
  0x10   : > { %p10405_p6 = por %p236_p3, %p128_p0  ;;  %s10312_s14 = smov [#allocation2]  }
  0x11   : > { %s11683_s11 = scalar_select %p10400_p4, 1, 0 }
  0x12   : > { %s11684_s12 = scalar_select %p10405_p6, 1, 0 }
  0x13   : > { %p10410_p8 = pnand %p8806_p5, %p243_p7  ;;  %s255_s15 = sshll.u32 %s10312_s14, 4  ;;  %s256_s15 = int_to_ptr.vmem [resolvable:$true] %s255_s15 }
  0x14   : > { %11685 = sst [smem:[#allocation23_spill]] %s11684_s12  ;;  %s10424_s17 = sadd.s32 1, %s10310_s30  }
  0x15   : > { %s11686_s13 = scalar_select %p10410_p8, 1, 0 }
  0x16   : > { %p9934_p9 = pneg %p10410_p8  ;;  %11688 = sst [smem:[#allocation24_spill]] %s10424_s17 }
  0x17   : > { %s115_s18 = sadd.s32 1, %s10306_s29  ;;  %s112_s19 = ssub.s32 %s10310_s30, %s10424_s17 }
  0x18   : > { %p10419_p11 = pnand %p9934_p9, %p11630_p1  ;;  %s10029_s20 = scalar_lea.vmem %s256_s15, 256 }
  0x19   : > { %p10030_p13 = scmp.ne.s32.totalorder %s256_s15, %s10029_s20  ;;  %p10037_p5 = scmp.lt.s32.totalorder %s256_s15, %s256_s15 }
  0x1a   : > { %s11687_s16 = scalar_select %p10419_p11, 1, 0 }
  0x1b   : > { %p11631_p12 = pneg %p10419_p11  ;;  %p10038_p7 = scmp.lt.s32.totalorder %s10029_s20, %s10029_s20 }
  0x1d   : > { %p10032_p0 = pnand %p10030_p13, %p11631_p12  ;;  %p10039_p9 = por %p10038_p7, %p10037_p5 }
  0x1f   : > { %p10033_p3 = pneg %p10032_p0 }
  0x21   : > { %p10040_p10 = pnand %p10039_p9, %p10033_p3 }
  0x23   : > { %10043 = shalt.err (!%p10040_p10)
}
  0x24   : > { %s11626_s21 = smov 128   ;;  %s11628_s22 = smov 8  }
  0x25   : > { %s11689_s0 = sld [smem:[#allocation44_spill]]  ;;  %p113_p10 = scmp.eq.s32.totalorder %s112_s19, 0 }
  0x26   : > { %p122_p13 = scmp.ne.s32.totalorder %s10306_s29, %s10302_s28  ;;  %p123_p0 = scmp.eq.s32.totalorder %s10310_s30, 0 }
  0x27   : > { %p9968_p3 = scmp.lt.s32.totalorder %s10310_s30, 2  ;;  %s308_s10 = sand.u32 1, %s10310_s30  }
  0x28   : > { %s10447_s25 = scalar_select %p113_p10, %s10306_s29, %s115_s18  }
  0x29   : > { %p124_p5 = por %p123_p0, %p122_p13  ;;  %p10451_p7 = por %p230_p2, %p122_p13 }
  0x2a   : > { %11690 = sst [smem:[#allocation25_spill]] %s10447_s25  ;;  %s310_s14 = sand.u32 1, %s10306_s29  }
  0x2b   : > { %9937 = dma.hbm_to_vmem [thread:$0]  (!%p10419_p11), %s11689_s0, 256, %s256_s15, [#allocation3], %s11626_s21, %s11626_s21, %s11628_s22  }
  0x2c   : > { %s11691_s26 = scalar_select %p10451_p7, 1, 0 }
  0x2d   : > { %s8812_s20 = sshll.u32 %s310_s14, 4  ;;  %s8847_s17 = sshll.u32 %s10310_s30, 8 }
  0x2e   : > { %s11692_s4 = sld [smem:[#allocation45_spill]]  ;;  %s312_s18 = scalar_lea.vmem [#allocation10], %s8812_s20 }
  0x2f   : > { %s319_s19 = sshll.u32 %s312_s18, 4  ;;  %p10465_p2 = pnand %p9968_p3, %p124_p5  ;;  %s10463_s19 = int_to_ptr.vmem [resolvable:$true] %s319_s19 }
  0x30   : > { %s10469_s21 = sshll.u32 %s310_s14, 5  ;;  %s10472_s22 = sshll.u32 %s10310_s30, 9 }
  0x31   : > { %s10474_s0 = scalar_lea.sflag [#allocation3], %s308_s10  ;;  %p10480_p10 = pneg %p10465_p2 }
  0x34   : > { %s10461_s15 = scalar_lea.hbm %s11692_s4, %s8847_s17  ;;  %s10049_s14 = scalar_lea.hbm %s11692_s4, 512 }
  0x35   : > { %s10044_s12 = scalar_lea.hbm %s10461_s15, 256  ;;  %p10050_p3 = scmp.lt.s32.totalorder %s10461_s15, %s11692_s4 }
  0x36   : > { %p10045_p9 = scmp.ne.s32.totalorder %s10461_s15, %s10044_s12  ;;  %p10051_p5 = scmp.lt.s32.totalorder %s10049_s14, %s10044_s12 }
  0x38   : > { %p10047_p13 = pnand %p10480_p10, %p10045_p9  ;;  %p10052_p1 = por %p10051_p5, %p10050_p3 }
  0x3a   : > { %p10048_p0 = pneg %p10047_p13 }
  0x3c   : > { %p10053_p12 = pnand %p10052_p1, %p10048_p0 }
  0x3e   : > { %10056 = shalt.err (!%p10053_p12)
}
  0x3f   : > { %s10057_s10 = scalar_lea.vmem %s10463_s19, 256  ;;  %s10315_s29 = smov [#allocation10]  }
  0x40   : > { %p10058_p6 = scmp.ne.s32.totalorder %s10463_s19, %s10057_s10  ;;  %s10062_s20 = sshll.u32 %s10315_s29, 4  ;;  %s10063_s20 = int_to_ptr.vmem [resolvable:$false] %s10062_s20 }
  0x41   : > { %s10064_s23 = scalar_lea.vmem %s10063_s20, 512  ;;  %p10065_p7 = scmp.lt.s32.totalorder %s10463_s19, %s10063_s20 }
  0x42   : > { %p10060_p9 = pnand %p10058_p6, %p10480_p10  ;;  %p10066_p4 = scmp.lt.s32.totalorder %s10064_s23, %s10057_s10 }
  0x44   : > { %p10061_p13 = pneg %p10060_p9  ;;  %p10067_p8 = por %p10066_p4, %p10065_p7 }
  0x46   : > { %p10068_p11 = pnand %p10067_p8, %p10061_p13 }
  0x48   : > { %10071 = shalt.err (!%p10068_p11)
}
  0x49   : > { %s11695_s25 = smov 8   ;;  %s11696_s12 = smov 128  }
  0x4a   : > { %9950 = dma.hbm_to_vmem [thread:$0]  (!%p10465_p2), %s10461_s15, 256, %s10463_s19, %s10474_s0, %s11696_s12, %s11696_s12, %s11695_s25  }
  0x4b   : > { %s10510_s18 = scalar_lea.hbm %s11619_s5, %s10472_s22  ;;  %s333_s10 = scalar_lea.vmem [#allocation11], %s10469_s21 }
  0x4c   : > { %s340_s20 = sshll.u32 %s333_s10, 4  ;;  %s10072_s23 = scalar_lea.hbm %s10510_s18, 512  ;;  %s341_s20 = int_to_ptr.vmem [resolvable:$true] %s340_s20 }
  0x4d   : > { %p10073_p1 = scmp.ne.s32.totalorder %s10510_s18, %s10072_s23  ;;  %s10077_s15 = scalar_lea.hbm %s11619_s5, 1024 }
  0x4e   : > { %p10078_p8 = scmp.lt.s32.totalorder %s10510_s18, %s11619_s5  ;;  %p10079_p11 = scmp.lt.s32.totalorder %s10077_s15, %s10072_s23 }
  0x4f   : > { %p10075_p4 = pnand %p10073_p1, %p10480_p10 }
  0x50   : > { %p10080_p12 = por %p10079_p11, %p10078_p8 }
  0x51   : > { %p10076_p6 = pneg %p10075_p4 }
  0x53   : > { %p10081_p7 = pnand %p10080_p12, %p10076_p6 }
  0x55   : > { %10084 = shalt.err (!%p10081_p7)
}
  0x56   : > { %s10085_s29 = scalar_lea.vmem %s341_s20, 512  ;;  %s10316_s14 = smov [#allocation11]  }
  0x57   : > { %p10086_p0 = scmp.ne.s32.totalorder %s341_s20, %s10085_s29  ;;  %s10090_s10 = sshll.u32 %s10316_s14, 4  ;;  %s10091_s10 = int_to_ptr.vmem [resolvable:$false] %s10090_s10 }
  0x58   : > { %s10092_s8 = scalar_lea.vmem %s10091_s10, 1024  ;;  %p10093_p9 = scmp.lt.s32.totalorder %s341_s20, %s10091_s10 }
  0x59   : > { %p10088_p3 = pnand %p10086_p0, %p10480_p10  ;;  %p10094_p13 = scmp.lt.s32.totalorder %s10092_s8, %s10085_s29 }
  0x5b   : > { %p10089_p5 = pneg %p10088_p3  ;;  %p10095_p1 = por %p10094_p13, %p10093_p9 }
  0x5d   : > { %p10096_p4 = pnand %p10095_p1, %p10089_p5 }
  0x5f   : > { %10099 = shalt.err (!%p10096_p4)
}
  0x60   : > { %9953 = dma.hbm_to_vmem [thread:$0]  (!%p10465_p2), %s10510_s18, 512, %s341_s20, %s10474_s0, %s11696_s12, %s11696_s12, %s11695_s25  }
  0x61   : > { %s10317_s4 = smov [#allocation5]   ;;  %s10537_s8 = scalar_lea.hbm %s11620_s6, %s10472_s22 }
  0x62   : > { %s268_s27 = sshll.u32 %s10317_s4, 4  ;;  %p11697_p8 = scmp.ne.s32.totalorder %s11687_s16, 0  ;;  %s269_s27 = int_to_ptr.vmem [resolvable:$true] %s268_s27 }
  0x63   : > { %s10111_s15 = scalar_lea.vmem %s269_s27, 256  ;;  %p10119_p0 = scmp.lt.s32.totalorder %s269_s27, %s269_s27 }
  0x64   : > { %p10112_p6 = scmp.ne.s32.totalorder %s269_s27, %s10111_s15  ;;  %p11698_p11 = pneg %p11697_p8 }
  0x65   : > { %p10120_p3 = scmp.lt.s32.totalorder %s10111_s15, %s10111_s15 }
  0x66   : > { %p10114_p12 = pnand %p10112_p6, %p11698_p11 }
  0x67   : > { %p10121_p5 = por %p10120_p3, %p10119_p0 }
  0x68   : > { %p10115_p7 = pneg %p10114_p12 }
  0x6a   : > { %p10122_p9 = pnand %p10121_p5, %p10115_p7 }
  0x6c   : > { %10125 = shalt.err (!%p10122_p9)
}
  0x6d   : > { %9940 = dma.hbm_to_vmem [thread:$0]  (!%p11697_p8), %s11615_s1, 256, %s269_s27, [#allocation6], %s11696_s12, %s11696_s12, %s11695_s25  }
  0x6e   : > { %s354_s19 = scalar_lea.vmem [#allocation12], %s10469_s21  ;;  %s10318_s14 = smov [#allocation7]  }
  0x6f   : > { %s361_s29 = sshll.u32 %s354_s19, 4  ;;  %s10553_s10 = sshll.u32 %s10318_s14, 4  ;;  %s10551_s29 = int_to_ptr.vmem [resolvable:$true] %s361_s29  ;;  %s282_s10 = int_to_ptr.vmem [resolvable:$true] %s10553_s10 }
  0x70   : > { %s10126_s4 = scalar_lea.hbm %s10537_s8, 512  ;;  %s10131_s15 = scalar_lea.hbm %s11620_s6, 1024 }
  0x71   : > { %p10127_p13 = scmp.ne.s32.totalorder %s10537_s8, %s10126_s4  ;;  %p10132_p6 = scmp.lt.s32.totalorder %s10537_s8, %s11620_s6 }
  0x72   : > { %p10133_p11 = scmp.lt.s32.totalorder %s10131_s15, %s10126_s4 }
  0x73   : > { %p10129_p1 = pnand %p10127_p13, %p10480_p10 }
  0x74   : > { %p10134_p12 = por %p10133_p11, %p10132_p6 }
  0x75   : > { %p10130_p4 = pneg %p10129_p1 }
  0x77   : > { %p10135_p7 = pnand %p10134_p12, %p10130_p4 }
  0x79   : > { %10138 = shalt.err (!%p10135_p7)
}
  0x7a   : > { %s10139_s27 = scalar_lea.vmem %s10551_s29, 512  ;;  %s10319_s19 = smov [#allocation12]  }
  0x7b   : > { %p10140_p0 = scmp.ne.s32.totalorder %s10551_s29, %s10139_s27  ;;  %s10144_s14 = sshll.u32 %s10319_s19, 4  ;;  %s10145_s14 = int_to_ptr.vmem [resolvable:$false] %s10144_s14 }
  0x7c   : > { %s10146_s30 = scalar_lea.vmem %s10145_s14, 1024  ;;  %p10147_p9 = scmp.lt.s32.totalorder %s10551_s29, %s10145_s14 }
  0x7d   : > { %p10142_p3 = pnand %p10140_p0, %p10480_p10  ;;  %p10148_p13 = scmp.lt.s32.totalorder %s10146_s30, %s10139_s27 }
  0x7f   : > { %p10143_p5 = pneg %p10142_p3  ;;  %p10149_p1 = por %p10148_p13, %p10147_p9 }
  0x81   : > { %p10150_p8 = pnand %p10149_p1, %p10143_p5 }
  0x83   : > { %10153 = shalt.err (!%p10150_p8)
}
  0x84   : > { %9956 = dma.hbm_to_vmem [thread:$0]  (!%p10465_p2), %s10537_s8, 512, %s10551_s29, %s10474_s0, %s11696_s12, %s11696_s12, %s11695_s25  }
  0x85   : > { %s10165_s4 = scalar_lea.vmem %s282_s10, 256  ;;  %p11699_p6 = scmp.ne.s32.totalorder %s11687_s16, 0 }
  0x86   : > { %p10166_p4 = scmp.ne.s32.totalorder %s282_s10, %s10165_s4  ;;  %p10173_p0 = scmp.lt.s32.totalorder %s282_s10, %s282_s10 }
  0x87   : > { %p11700_p11 = pneg %p11699_p6  ;;  %p10174_p8 = scmp.lt.s32.totalorder %s10165_s4, %s10165_s4 }
  0x89   : > { %p10168_p12 = pnand %p10166_p4, %p11700_p11  ;;  %p10175_p3 = por %p10174_p8, %p10173_p0 }
  0x8b   : > { %p10169_p7 = pneg %p10168_p12 }
  0x8d   : > { %p10176_p5 = pnand %p10175_p3, %p10169_p7 }
  0x8f   : > { %10179 = shalt.err (!%p10176_p5)
}
  0x90   : > { %9943 = dma.hbm_to_vmem [thread:$0]  (!%p11699_p6), %s11616_s2, 256, %s282_s10, [#allocation6], %s11696_s12, %s11696_s12, %s11695_s25  }
  0x91   : > { %s10320_s8 = smov [#allocation8]   ;;  %s10595_s27 = scalar_lea.hbm %s11621_s7, %s10472_s22 }
  0x92   : > { %s294_s29 = sshll.u32 %s10320_s8, 4  ;;  %p11701_p13 = pmov %p11700_p11  ;;  %s295_s29 = int_to_ptr.vmem [resolvable:$true] %s294_s29 }
  0x93   : > { %s10191_s19 = scalar_lea.vmem %s295_s29, 256  ;;  %p10199_p11 = scmp.lt.s32.totalorder %s295_s29, %s295_s29 }
  0x94   : > { %p10192_p9 = scmp.ne.s32.totalorder %s295_s29, %s10191_s19  ;;  %p10200_p12 = scmp.lt.s32.totalorder %s10191_s19, %s10191_s19 }
  0x96   : > { %p10194_p1 = pnand %p10192_p9, %p11701_p13  ;;  %p10201_p7 = por %p10200_p12, %p10199_p11 }
  0x98   : > { %p10195_p4 = pneg %p10194_p1 }
  0x9a   : > { %p10202_p0 = pnand %p10201_p7, %p10195_p4 }
  0x9c   : > { %10205 = shalt.err (!%p10202_p0)
}
  0x9d   : > { %9946 = dma.hbm_to_vmem [thread:$0]  (!%p11699_p6), %s11617_s3, 256, %s295_s29, [#allocation9], %s11696_s12, %s11696_s12, %s11695_s25  }
  0x9e   : > { %s375_s22 = scalar_lea.vmem [#allocation13], %s10469_s21  ;;  %s10206_s4 = scalar_lea.hbm %s10595_s27, 512 }
  0x9f   : > { %s382_s30 = sshll.u32 %s375_s22, 4  ;;  %p10207_p8 = scmp.ne.s32.totalorder %s10595_s27, %s10206_s4  ;;  %s383_s30 = int_to_ptr.vmem [resolvable:$true] %s382_s30 }
  0xa0   : > { %s10211_s15 = scalar_lea.hbm %s11621_s7, 1024  ;;  %p10212_p9 = scmp.lt.s32.totalorder %s10595_s27, %s11621_s7 }
  0xa1   : > { %p10209_p3 = pnand %p10207_p8, %p10480_p10  ;;  %p10213_p13 = scmp.lt.s32.totalorder %s10211_s15, %s10206_s4 }
  0xa3   : > { %p10210_p5 = pneg %p10209_p3  ;;  %p10214_p1 = por %p10213_p13, %p10212_p9 }
  0xa5   : > { %p10215_p4 = pnand %p10214_p1, %p10210_p5 }
  0xa7   : > { %10218 = shalt.err (!%p10215_p4)
}
  0xa8   : > { %s10219_s21 = scalar_lea.vmem %s383_s30, 512  ;;  %s10321_s29 = smov [#allocation13]  }
  0xa9   : > { %p10220_p6 = scmp.ne.s32.totalorder %s383_s30, %s10219_s21  ;;  %s10224_s20 = sshll.u32 %s10321_s29, 4  ;;  %s10225_s20 = int_to_ptr.vmem [resolvable:$false] %s10224_s20 }
  0xaa   : > { %s10226_s19 = scalar_lea.vmem %s10225_s20, 1024  ;;  %p10227_p7 = scmp.lt.s32.totalorder %s383_s30, %s10225_s20 }
  0xab   : > { %p10222_p11 = pnand %p10220_p6, %p10480_p10  ;;  %p10228_p0 = scmp.lt.s32.totalorder %s10226_s19, %s10219_s21 }
  0xad   : > { %p10223_p12 = pneg %p10222_p11  ;;  %p10229_p8 = por %p10228_p0, %p10227_p7 }
  0xaf   : > { %p10230_p3 = pnand %p10229_p8, %p10223_p12 }
  0xb1   : > { %10233 = shalt.err (!%p10230_p3)
}
  0xb2   : > { %9959 = dma.hbm_to_vmem [thread:$0]  (!%p10465_p2), %s10595_s27, 512, %s383_s30, %s10474_s0, %s11696_s12, %s11696_s12, %s11695_s25  }
  0xb3   : > { %p11702_p10 = scmp.ne.s32.totalorder %s11686_s13, 0 }
  0xb5   : > { %394 = sbr.rel (%p11702_p10) target bundleno = 1305 (0x519), region = 52 }
  0xba   : > { %p11703_p5 = scmp.eq.s32.totalorder %s10391_s9, 0 }
  0xbc   : > { %10277 = dma.done.wait (%p11703_p5), [#allocation3], 256   ;;  %p11704_p9 = pmov %p11703_p5 }
  0xbd   : > { %p11705_p13 = pmov %p11703_p5 }
  0xbe   : > { %10279 = vsyncadd (%p11704_p9), [#allocation3], 4294967040 }
  0xbf   : > { %10281 = dma.done.wait (%p11705_p13), [#allocation6], 512   ;;  %p11706_p1 = pmov %p11703_p5 }
  0xc1   : > { %10283 = vsyncadd (%p11706_p1), [#allocation6], 4294966784  ;;  %p11707_p4 = pmov %p11706_p1 }
  0xc2   : > { %p11708_p2 = pmov %p11706_p1 }
  0xc3   : > { %10285 = dma.done.wait (%p11707_p4), [#allocation9], 256  }
  0xc4   : > { %10287 = vsyncadd (%p11708_p2), [#allocation9], 4294967040  ;;  %s412_s0 = sand.u32 1, %s10391_s9   ;;  %s10645_s13 = sand.u32 1, %s10302_s28  }
  0xc5   : > { %s8829_s24 = sshll.u32 %s10645_s13, 4  ;;  %s413_s17 = scalar_lea.sflag [#allocation3], %s412_s0 }
  0xc6   : > { %s10648_s25 = scalar_lea.vmem [#allocation10], %s8829_s24  ;;  %p11709_p6 = scmp.ne.s32.totalorder %s11683_s11, 0 }
  0xc8   : > { %10289 = dma.done.wait (%p11709_p6), %s413_s17, 1792  }
  0xc9   : > { %10291 = vsyncadd (%p11709_p6), %s413_s17, 4294965504  ;;  %s10655_s12 = sshll.u32 %s10645_s13, 5  ;;  %vm513_vm0 = vcmask 130048   ;;  %v491_v5 = vld [vmem:[#allocation2] sm:$0xff]  ;;  %v492_v6 = vld [vmem:[#allocation2 + $0x8] sm:$0xff]  ;;  %s8851_s30 = sshll.u32 %s10391_s9, 9 }
  0xca   : > { %s434_s27 = scalar_lea.vmem [#allocation12], %s10655_s12  ;;  %s443_s10 = scalar_lea.vmem [#allocation13], %s10655_s12  ;;  %v515_v8 = vsel %vm513_vm0, %v491_v5, 0  ;;  %v518_v9 = vsel %vm513_vm0, %v492_v6, 0  ;;  %v493_v15 = vld [vmem:[#allocation5] sm:$0xff]  ;;  %v494_v17 = vld [vmem:[#allocation5 + $0x8] sm:$0xff] }
  0xcb   : > { %v500_v0 = vld [vmem:[%s434_s27 + $0x8] sm:$0xff]  ;;  %v499_v2 = vld [vmem:[%s434_s27] sm:$0xff]  ;;  %v10663_v11 = vand.u32 4294901760, %v515_v8  ;;  %v10665_v12 = vand.u32 4294901760, %v518_v9  ;;  %v8835_v13 = vld [vmem:[%s434_s27 + $0x18] sm:$0xff]  ;;  %v1023_v25 = vsel %vm513_vm0, %v493_v15, 0 }
  0xcc   : > { %v502_v1 = vld [vmem:[%s443_s10 + $0x8] sm:$0xff]  ;;  %v501_v4 = vld [vmem:[%s443_s10] sm:$0xff]  ;;  %v8837_v14 = vld [vmem:[%s443_s10 + $0x18] sm:$0xff]  ;;  %v1026_v29 = vsel %vm513_vm0, %v494_v17, 0  ;;  %v10707_v35 = vand.u32 4294901760, %v1023_v25  ;;  %s425_s11 = scalar_lea.vmem [#allocation11], %s10655_s12 }
  0xcd   : > { %v504_v3 = vsub.f32 %v500_v0, %v502_v1  ;;  %v503_v7 = vsub.f32 %v499_v2, %v501_v4  ;;  %v10671_v18 = vsub.f32 %v515_v8, %v10663_v11  ;;  %v10674_v19 = vsub.f32 %v518_v9, %v10665_v12  ;;  %9247 = vmatprep.mubr.f32.mxu1 %v10663_v11  ;;  %v8834_v21 = vld [vmem:[%s434_s27 + $0x10] sm:$0xff]  ;;  %v496_v60 = vld [vmem:[#allocation7 + $0x8] sm:$0xff]  ;;  %v495_v62 = vld [vmem:[#allocation7] sm:$0xff]  ;;  %s11554_s14 = scalar_lea.vmem [#allocation14], %s10655_s12  ;;  %s11746_s23 = sld [smem:[#allocation46_spill]] }
  0xce   : > { %v8836_v22 = vld [vmem:[%s443_s10 + $0x10] sm:$0xff]  ;;  %v512_v24 = vsub.f32 %v8835_v13, %v8837_v14  ;;  %v10711_v37 = vand.u32 4294901760, %v1026_v29  ;;  %v10728_v44 = vsub.f32 %v1023_v25, %v10707_v35  ;;  %v10903_v61 = vand.u32 4294901760, %v496_v60  ;;  %s8634_s22 = sshll.u32 %s11554_s14, 4  ;;  %s8621_s9 = scalar_lea.sflag [#allocation4], %s10645_s13  ;;  %s11562_s22 = int_to_ptr.vmem [resolvable:$true] %s8634_s22 }
  0xcf   : > { %v10661_v10 = vand.u32 4294901760, %v504_v3  ;;  %v10667_v16 = vand.u32 4294901760, %v503_v7  ;;  %v10687_v26 = vand.u32 4294901760, %v10671_v18  ;;  %v10690_v27 = vand.u32 4294901760, %v10674_v19  ;;  %s10234_s8 = scalar_lea.vmem %s11562_s22, 512  ;;  %p11747_p12 = scmp.ne.s32.totalorder %s11691_s26, 0 }
  0xd0   : > { %v511_v31 = vsub.f32 %v8834_v21, %v8836_v22  ;;  %v10719_v41 = vand.u32 4294901760, %v512_v24  ;;  %v10733_v45 = vsub.f32 %v1026_v29, %v10711_v37  ;;  %v10745_v47 = vand.u32 4294901760, %v10728_v44  ;;  %11712 = vst [vmem:[#allocation28_spill] sm:$0xff] %v10903_v61  ;;  %p10235_p11 = scmp.ne.s32.totalorder %s11562_s22, %s10234_s8  ;;  %s10322_s18 = smov [#allocation14]  }
  0xd1   : > { %9236 = vmatprep.subr.mxu0 %v10661_v10  ;;  %v10677_v20 = vsub.f32 %v504_v3, %v10661_v10  ;;  %v10682_v23 = vsub.f32 %v503_v7, %v10667_v16  ;;  %11710 = vst [vmem:[#allocation26_spill] sm:$0xff] %v10690_v27  ;;  %v590_v32 = vsub.f32 %v10671_v18, %v10687_v26  ;;  %v10908_v0 = vand.u32 4294901760, %v495_v62  ;;  %s10238_s21 = sshll.u32 %s10322_s18, 4  ;;  %s10239_s21 = int_to_ptr.vmem [resolvable:$false] %s10238_s21 }
  0xd2   : > { %9237 = vmatpush3.msra.mxu0 %v10661_v10  ;;  %v600_v33 = vsub.f32 %v10674_v19, %v10690_v27  ;;  %v10725_v43 = vand.u32 4294901760, %v511_v31  ;;  %v10738_v46 = vsub.f32 %v512_v24, %v10719_v41  ;;  %v10753_v49 = vand.u32 4294901760, %v10733_v45  ;;  %p10236_p7 = pnand %p10235_p11, %p11747_p12  ;;  %s10240_s29 = scalar_lea.vmem %s10239_s21, 1024 }
  0xd3   : > { %9238 = vmatprep.subr.mxu0 %v10667_v16  ;;  %v10693_v28 = vand.u32 4294901760, %v10677_v20  ;;  %v10698_v30 = vand.u32 4294901760, %v10682_v23  ;;  %v10713_v38 = vand.u32 4294901760, %v590_v32  ;;  %v1098_v51 = vsub.f32 %v10728_v44, %v10745_v47  ;;  %11714 = vst [vmem:[#allocation30_spill] sm:$0xff] %v10908_v0  ;;  %s11567_s15 = scalar_lea.hbm %s11746_s23, %s8851_s30  ;;  %p10241_p8 = scmp.lt.s32.totalorder %s11562_s22, %s10239_s21 }
  0xd4   : > { %9239 = vmatpush3.msra.mxu0 %v10667_v16  ;;  %v10715_v39 = vand.u32 4294901760, %v600_v33  ;;  %v10748_v48 = vsub.f32 %v511_v31, %v10725_v43  ;;  %v10758_v50 = vand.u32 4294901760, %v10738_v46  ;;  %v1108_v53 = vsub.f32 %v10733_v45, %v10753_v49  ;;  %p10237_p0 = pneg %p10236_p7  ;;  %p10242_p3 = scmp.lt.s32.totalorder %s10240_s29, %s10234_s8 }
  0xd5   : > { %v639_v34 = vsub.f32 %v10677_v20, %v10693_v28  ;;  %9250 = vmatprep.subr.mxu0 %v10677_v20  ;;  %v646_v36 = vsub.f32 %v10682_v23, %v10698_v30  ;;  %9240 = vmatprep.mubr.f32.mxu0 %v10713_v38  ;;  %v10781_v55 = vand.u32 4294901760, %v1098_v51  ;;  %v10906_v63 = vsub.f32 %v496_v60, %v10903_v61  ;;  %v498_v60 = vld [vmem:[#allocation8 + $0x8] sm:$0xff] }
  0xd6   : > { %9241 = vmatmul.mubr.f32.vlgmr.msra.gmra.mxu0 %v10715_v39  ;;  %v10767_v52 = vand.u32 4294901760, %v10748_v48  ;;  %v1147_v54 = vsub.f32 %v10738_v46, %v10758_v50  ;;  %v10787_v57 = vand.u32 4294901760, %v1108_v53  ;;  %v10916_v2 = vsub.f32 %v495_v62, %v10908_v0  ;;  %p10243_p10 = por %p10242_p3, %p10241_p8 }
  0xd7   : > { %v10717_v40 = vand.u32 4294901760, %v639_v34  ;;  %v10721_v42 = vand.u32 4294901760, %v646_v36  ;;  %9251 = vmatpush3.msra.mxu0 %v10677_v20  ;;  %9254 = vmatprep.mubr.f32.mxu0 %v10671_v18  ;;  %11711 = vst [vmem:[#allocation27_spill] sm:$0xff] %v10781_v55  ;;  %11713 = vst [vmem:[#allocation29_spill] sm:$0xff] %v10906_v63  ;;  %v10913_v1 = vand.u32 4294901760, %v10906_v63 }
  0xd8   : > { %9252 = vmatprep.subr.mxu0 %v10682_v23  ;;  %v1154_v56 = vsub.f32 %v10748_v48, %v10767_v52  ;;  %v10791_v58 = vand.u32 4294901760, %v1147_v54  ;;  %11716 = vst [vmem:[#allocation32_spill] sm:$0xff] %v10916_v2  ;;  %v10923_v4 = vand.u32 4294901760, %v10916_v2  ;;  %p10244_p5 = pnand %p10243_p10, %p10237_p0 }
  0xd9   : > { %9243 = vmatprep.subr.mxu1 %v10717_v40  ;;  %9253 = vmatpush3.msra.mxu0 %v10682_v23  ;;  %11715 = vst [vmem:[#allocation31_spill] sm:$0xff] %v10913_v1  ;;  %v2661_v3 = vsub.f32 %v10906_v63, %v10913_v1 }
  0xda   : > { %9244 = vmatpush3.msra.mxu1 %v10717_v40  ;;  %9255 = vmatmul.mubr.f32.vlgmr.msra.gmra.mxu0 %v10674_v19  ;;  %v10797_v59 = vand.u32 4294901760, %v1154_v56  ;;  %11717 = vst [vmem:[#allocation33_spill] sm:$0xff] %v10923_v4  ;;  %v2668_v6 = vsub.f32 %v10916_v2, %v10923_v4 }
  0xdb   : > { %9245 = vmatprep.subr.mxu1 %v10721_v42  ;;  %9264 = vmatprep.subr.mxu0 %v10693_v28  ;;  %v10926_v5 = vand.u32 4294901760, %v2661_v3 }
  0xdc   : > { %9246 = vmatpush3.msra.mxu1 %v10721_v42  ;;  %9265 = vmatpush3.msra.mxu0 %v10693_v28  ;;  %v10931_v7 = vand.u32 4294901760, %v2668_v6 }
  0xdd   : > { %9248 = vmatmul.mubr.f32.vlgmr.msra.gmra.mxu1 %v10665_v12  ;;  %9257 = vmatprep.subr.mxu1 %v10661_v10  ;;  %11718 = vst [vmem:[#allocation34_spill] sm:$0xff] %v10926_v5 }
  0xde   : > { %9258 = vmatpush3.msra.mxu1 %v10661_v10  ;;  %9266 = vmatprep.subr.mxu0 %v10698_v30  ;;  %11719 = vst [vmem:[#allocation35_spill] sm:$0xff] %v10931_v7 }
  0xdf   : > { %9259 = vmatprep.subr.mxu1 %v10667_v16  ;;  %9261 = vmatprep.mubr.f32.mxu1 %v10687_v26 }
  0xe0   : > { %9260 = vmatpush3.msra.mxu1 %v10667_v16  ;;  %9267 = vmatpush3.msra.mxu0 %v10698_v30 }
  0xe1   : > { %9268 = vmatprep.mubr.f32.mxu0 %v10663_v11  ;;  %9262 = vmatmul.mubr.f32.vlgmr.msra.gmra.mxu1 %v10690_v27 }
  0xe2   : > { %9269 = vmatmul.mubr.f32.vlgmr.msra.gmra.mxu0 %v10665_v12  ;;  %9271 = vmatprep.subr.mxu1 %v10661_v10 }
  0xe3   : > { %9278 = vmatprep.subr.mxu0 %v10719_v41  ;;  %9272 = vmatpush3.msra.mxu1 %v10661_v10 }
  0xe4   : > { %9279 = vmatpush3.msra.mxu0 %v10719_v41  ;;  %9273 = vmatprep.subr.mxu1 %v10667_v16 }
  0xe5   : > { %9280 = vmatprep.subr.mxu0 %v10725_v43  ;;  %9274 = vmatpush3.msra.mxu1 %v10667_v16 }
  0xe6   : > { %9275 = vmatprep.mubr.f32.mxu1 %v10663_v11  ;;  %9281 = vmatpush3.msra.mxu0 %v10725_v43 }
  0xe7   : > { %9282 = vmatprep.mubr.f32.mxu0 %v10781_v55  ;;  %9276 = vmatmul.mubr.f32.vlgmr.msra.gmra.mxu1 %v10665_v12 }
  0xe8   : > { %9283 = vmatmul.mubr.f32.vlgmr.msra.gmra.mxu0 %v10787_v57  ;;  %9285 = vmatprep.subr.mxu1 %v10791_v58 }
  0xe9   : > { %9292 = vmatprep.subr.mxu0 %v10738_v46  ;;  %9286 = vmatpush3.msra.mxu1 %v10791_v58 }
  0xea   : > { %9293 = vmatpush3.msra.mxu0 %v10738_v46  ;;  %9287 = vmatprep.subr.mxu1 %v10797_v59 }
  0xeb   : > { %9294 = vmatprep.subr.mxu0 %v10748_v48  ;;  %9288 = vmatpush3.msra.mxu1 %v10797_v59 }
  0xec   : > { %9289 = vmatprep.mubr.f32.mxu1 %v10707_v35  ;;  %9295 = vmatpush3.msra.mxu0 %v10748_v48 }
  0xed   : > { %9296 = vmatprep.mubr.f32.mxu0 %v10728_v44  ;;  %9290 = vmatmul.mubr.f32.vlgmr.msra.gmra.mxu1 %v10711_v37 }
  0xee   : > { %9297 = vmatmul.mubr.f32.vlgmr.msra.gmra.mxu0 %v10733_v45  ;;  %9299 = vmatprep.subr.mxu1 %v10719_v41 }
  0xef   : > { %9306 = vmatprep.subr.mxu0 %v10758_v50  ;;  %9300 = vmatpush3.msra.mxu1 %v10719_v41 }
  0xf0   : > { %9307 = vmatpush3.msra.mxu0 %v10758_v50  ;;  %9301 = vmatprep.subr.mxu1 %v10725_v43 }
  0xf1   : > { %9308 = vmatprep.subr.mxu0 %v10767_v52  ;;  %9302 = vmatpush3.msra.mxu1 %v10725_v43 }
  0xf2   : > { %9303 = vmatprep.mubr.f32.mxu1 %v10745_v47  ;;  %9309 = vmatpush3.msra.mxu0 %v10767_v52 }
  0xf3   : > { %9310 = vmatprep.mubr.f32.mxu0 %v10707_v35  ;;  %9304 = vmatmul.mubr.f32.vlgmr.msra.gmra.mxu1 %v10753_v49 }
  0xf4   : > { %9311 = vmatmul.mubr.f32.vlgmr.msra.gmra.mxu0 %v10711_v37  ;;  %9313 = vmatprep.subr.mxu1 %v10719_v41 }
  0xf5   : > { %9320 = vmatprep.subr.mxu0 %v10661_v10  ;;  %9314 = vmatpush3.msra.mxu1 %v10719_v41 }
  0xf6   : > { %9321 = vmatpush3.msra.mxu0 %v10661_v10  ;;  %9315 = vmatprep.subr.mxu1 %v10725_v43 }
  0xf7   : > { %9322 = vmatprep.subr.mxu0 %v10667_v16  ;;  %9316 = vmatpush3.msra.mxu1 %v10725_v43 }
  0xf8   : > { %9317 = vmatprep.mubr.f32.mxu1 %v10707_v35  ;;  %9323 = vmatpush3.msra.mxu0 %v10667_v16 }
  0xf9   : > { %9324 = vmatprep.mubr.f32.mxu0 %v10781_v55  ;;  %9318 = vmatmul.mubr.f32.vlgmr.msra.gmra.mxu1 %v10711_v37 }
  0xfa   : > { %9325 = vmatmul.mubr.f32.vlgmr.msra.gmra.mxu0 %v10787_v57  ;;  %9327 = vmatprep.subr.mxu1 %v10717_v40 }
  0xfb   : > { %9334 = vmatprep.subr.mxu0 %v10677_v20  ;;  %9328 = vmatpush3.msra.mxu1 %v10717_v40 }
  0xfc   : > { %9335 = vmatpush3.msra.mxu0 %v10677_v20  ;;  %9329 = vmatprep.subr.mxu1 %v10721_v42 }
  0xfd   : > { %9336 = vmatprep.subr.mxu0 %v10682_v23  ;;  %9330 = vmatpush3.msra.mxu1 %v10721_v42 }
  0xfe   : > { %9331 = vmatprep.mubr.f32.mxu1 %v10707_v35  ;;  %9337 = vmatpush3.msra.mxu0 %v10682_v23 }
  0xff   : > { %9338 = vmatprep.mubr.f32.mxu0 %v10728_v44  ;;  %9332 = vmatmul.mubr.f32.vlgmr.msra.gmra.mxu1 %v10711_v37 }
 0x100   : > { %9339 = vmatmul.mubr.f32.vlgmr.msra.gmra.mxu0 %v10733_v45  ;;  %9341 = vmatprep.subr.mxu1 %v10661_v10 }
 0x101   : > { %9348 = vmatprep.subr.mxu0 %v10693_v28  ;;  %9342 = vmatpush3.msra.mxu1 %v10661_v10 }
 0x102   : > { %9349 = vmatpush3.msra.mxu0 %v10693_v28  ;;  %9343 = vmatprep.subr.mxu1 %v10667_v16 }
 0x103   : > { %9350 = vmatprep.subr.mxu0 %v10698_v30  ;;  %9344 = vmatpush3.msra.mxu1 %v10667_v16 }
 0x104   : > { %9345 = vmatprep.mubr.f32.mxu1 %v10745_v47  ;;  %9351 = vmatpush3.msra.mxu0 %v10698_v30 }
 0x105   : > { %9352 = vmatprep.mubr.f32.mxu0 %v10707_v35  ;;  %9346 = vmatmul.mubr.f32.vlgmr.msra.gmra.mxu1 %v10753_v49 }
 0x106   : > { %9353 = vmatmul.mubr.f32.vlgmr.msra.gmra.mxu0 %v10711_v37  ;;  %9355 = vmatprep.subr.mxu1 %v10661_v10 }
 0x107   : > { %9362 = vmatprep.subr.mxu0 %v10719_v41  ;;  %9356 = vmatpush3.msra.mxu1 %v10661_v10 }
 0x108   : > { %9363 = vmatpush3.msra.mxu0 %v10719_v41  ;;  %9357 = vmatprep.subr.mxu1 %v10667_v16 }
 0x109   : > { %9364 = vmatprep.subr.mxu0 %v10725_v43  ;;  %9358 = vmatpush3.msra.mxu1 %v10667_v16 }
 0x10a   : > { %9359 = vmatprep.mubr.f32.mxu1 %v10707_v35  ;;  %9365 = vmatpush3.msra.mxu0 %v10725_v43 }
 0x10b   : > { %9366 = vmatprep.mubr.f32.mxu0 %v10713_v38  ;;  %9360 = vmatmul.mubr.f32.vlgmr.msra.gmra.mxu1 %v10711_v37 }
 0x10c   : > { %9367 = vmatmul.mubr.f32.vlgmr.msra.gmra.mxu0 %v10715_v39  ;;  %9369 = vmatprep.subr.mxu1 %v10791_v58 }
 0x10d   : > { %9376 = vmatprep.subr.mxu0 %v10738_v46  ;;  %9370 = vmatpush3.msra.mxu1 %v10791_v58 }
 0x10e   : > { %9377 = vmatpush3.msra.mxu0 %v10738_v46  ;;  %9371 = vmatprep.subr.mxu1 %v10797_v59 }
 0x10f   : > { %9378 = vmatprep.subr.mxu0 %v10748_v48  ;;  %9372 = vmatpush3.msra.mxu1 %v10797_v59 }
 0x110   : > { %9373 = vmatprep.mubr.f32.mxu1 %v10663_v11  ;;  %9379 = vmatpush3.msra.mxu0 %v10748_v48 }
 0x111   : > { %9380 = vmatprep.mubr.f32.mxu0 %v10671_v18  ;;  %9374 = vmatmul.mubr.f32.vlgmr.msra.gmra.mxu1 %v10665_v12 }
 0x112   : > { %9381 = vmatmul.mubr.f32.vlgmr.msra.gmra.mxu0 %v10674_v19  ;;  %9383 = vmatprep.subr.mxu1 %v10719_v41 }
 0x113   : > { %9390 = vmatprep.subr.mxu0 %v10758_v50  ;;  %9384 = vmatpush3.msra.mxu1 %v10719_v41 }
 0x114   : > { %9391 = vmatpush3.msra.mxu0 %v10758_v50  ;;  %9385 = vmatprep.subr.mxu1 %v10725_v43 }
 0x115   : > { %9392 = vmatprep.subr.mxu0 %v10767_v52  ;;  %9386 = vmatpush3.msra.mxu1 %v10725_v43 }
 0x116   : > { %9387 = vmatprep.mubr.f32.mxu1 %v10687_v26  ;;  %9393 = vmatpush3.msra.mxu0 %v10767_v52 }
 0x117   : > { %9394 = vmatprep.mubr.f32.mxu0 %v10663_v11  ;;  %9388 = vmatmul.mubr.f32.vlgmr.msra.gmra.mxu1 %v10690_v27 }
 0x118   : > { %9395 = vmatmul.mubr.f32.vlgmr.msra.gmra.mxu0 %v10665_v12  ;;  %9397 = vmatprep.subr.mxu1 %v10719_v41 }
 0x119   : > { %9401 = vmatprep.mubr.f32.mxu1 %v10663_v11  ;;  %9398 = vmatpush3.msra.mxu1 %v10719_v41 }
 0x11a   : > { %9399 = vmatprep.subr.mxu1 %v10725_v43  ;;  %9404 = vmatprep.subr.mxu0 %v10903_v61 }
 0x11b   : > { %9400 = vmatpush3.msra.mxu1 %v10725_v43  ;;  %9405 = vmatpush3.msra.mxu0 %v10903_v61 }
 0x11c   : > { %9402 = vmatmul.mubr.f32.vlgmr.msra.gmra.mxu1 %v10665_v12  ;;  %9406 = vmatprep.subr.mxu0 %v10908_v0 }
 0x11d   : > { %9407 = vmatpush3.msra.mxu0 %v10908_v0  ;;  %9411 = vmatprep.subr.mxu1 %v10926_v5 }
 0x11e   : > { %9418 = vmatprep.subr.mxu0 %v10906_v63  ;;  %9412 = vmatpush3.msra.mxu1 %v10926_v5 }
 0x11f   : > { %9413 = vmatprep.subr.mxu1 %v10931_v7 }
 0x120   : > { %9414 = vmatpush3.msra.mxu1 %v10931_v7 }
 0x121   : > { %9425 = vmatprep.subr.mxu1 %v10903_v61 }
 0x196   : > { %v9242_v8 = vpop.f32.mrf.mxu0 }
 0x198   : > { %v593_v9 = vpop.f32.mrf.mxu0 }
 0x19a   : > { %v9256_v13 = vpop.f32.mrf.mxu0 }
 0x19c   : > { %v766_v15 = vpop.f32.mrf.mxu0 }
 0x19d   : > { %v9249_v10 = vpop.f32.mrf.mxu1 }
 0x19e   : > { %v691_v28 = vadd.f32 %v9249_v10, %v9242_v8 }
 0x19f   : > { %v684_v14 = vpop.f32.mrf.mxu1 }
 0x1a0   : > { %v685_v29 = vadd.f32 %v684_v14, %v593_v9  ;;  %v774_v32 = vadd.f32 %v9256_v13, %v691_v28  ;;  %v10937_v13 = vand.u32 4294901760, %v498_v60 }
 0x1a1   : > { %v9263_v16 = vpop.f32.mrf.mxu1 }
 0x1a2   : > { %v9270_v17 = vpop.f32.mrf.mxu0  ;;  %v767_v40 = vadd.f32 %v766_v15, %v685_v29  ;;  %v857_v43 = vadd.f32 %v9263_v16, %v774_v32  ;;  %11720 = vst [vmem:[#allocation36_spill] sm:$0xff] %v10937_v13  ;;  %v497_v16 = vld [vmem:[#allocation8] sm:$0xff]  ;;  %v10941_v29 = vsub.f32 %v498_v60, %v10937_v13 }
 0x1a3   : > { %v848_v20 = vpop.f32.mrf.mxu1 }
 0x1a4   : > { %v933_v21 = vpop.f32.mrf.mxu0  ;;  %v849_v51 = vadd.f32 %v848_v20, %v767_v40  ;;  %v940_v56 = vadd.f32 %v9270_v17, %v857_v43  ;;  %11721 = vst [vmem:[#allocation37_spill] sm:$0xff] %v10941_v29  ;;  %v10954_v43 = vand.u32 4294901760, %v10941_v29 }
 0x1a6   : > { %v934_v62 = vadd.f32 %v933_v21, %v849_v51  ;;  %v10943_v21 = vand.u32 4294901760, %v497_v16  ;;  %11723 = vst [vmem:[#allocation39_spill] sm:$0xff] %v10954_v43 }
 0x1a7   : > { %v9277_v22 = vpop.f32.mrf.mxu1 }
 0x1a8   : > { %v9284_v23 = vpop.f32.mrf.mxu0  ;;  %v1019_v9 = vadd.f32 %v9277_v22, %v940_v56  ;;  %11722 = vst [vmem:[#allocation38_spill] sm:$0xff] %v10943_v21 }
 0x1a9   : > { %v1012_v24 = vpop.f32.mrf.mxu1 }
 0x1aa   : > { %v1101_v25 = vpop.f32.mrf.mxu0 }
 0x1ad   : > { %v9291_v30 = vpop.f32.mrf.mxu1 }
 0x1ae   : > { %v9298_v31 = vpop.f32.mrf.mxu0  ;;  %v1199_v33 = vadd.f32 %v9291_v30, %v9284_v23  ;;  %v1013_v23 = vadd.f32 %v1012_v24, %v934_v62 }
 0x1af   : > { %v1192_v34 = vpop.f32.mrf.mxu1 }
 0x1b0   : > { %v1274_v36 = vpop.f32.mrf.mxu0  ;;  %v1282_v41 = vadd.f32 %v9298_v31, %v1199_v33  ;;  %v1193_v42 = vadd.f32 %v1192_v34, %v1101_v25 }
 0x1b2   : > { %v1275_v46 = vadd.f32 %v1274_v36, %v1193_v42 }
 0x1b3   : > { %v9305_v48 = vpop.f32.mrf.mxu1 }
 0x1b4   : > { %v9312_v50 = vpop.f32.mrf.mxu0  ;;  %v1365_v52 = vadd.f32 %v9305_v48, %v1282_v41 }
 0x1b5   : > { %v1356_v53 = vpop.f32.mrf.mxu1 }
 0x1b6   : > { %v1441_v54 = vpop.f32.mrf.mxu0  ;;  %v1448_v58 = vadd.f32 %v9312_v50, %v1365_v52  ;;  %v1357_v59 = vadd.f32 %v1356_v53, %v1275_v46  ;;  %v10957_v46 = vsub.f32 %v497_v16, %v10943_v21 }
 0x1b8   : > { %v1442_v3 = vadd.f32 %v1441_v54, %v1357_v59  ;;  %11724 = vst [vmem:[#allocation40_spill] sm:$0xff] %v10957_v46  ;;  %v3169_v59 = vsub.f32 %v10941_v29, %v10954_v43  ;;  %v10977_v60 = vand.u32 4294901760, %v10957_v46 }
 0x1b9   : > { %v9319_v6 = vpop.f32.mrf.mxu1 }
 0x1ba   : > { %v9326_v8 = vpop.f32.mrf.mxu0  ;;  %v1527_v10 = vadd.f32 %v9319_v6, %v1448_v58  ;;  %11725 = vst [vmem:[#allocation41_spill] sm:$0xff] %v10977_v60  ;;  %v10992_v16 = vand.u32 4294901760, %v3169_v59 }
 0x1bb   : > { %v1520_v14 = vpop.f32.mrf.mxu1 }
 0x1bc   : > { %v1605_v15 = vpop.f32.mrf.mxu0  ;;  %v1531_v20 = vsub.f32 %v1019_v9, %v1527_v10  ;;  %v1521_v25 = vadd.f32 %v1520_v14, %v1442_v3  ;;  %11726 = vst [vmem:[#allocation42_spill] sm:$0xff] %v10992_v16 }
 0x1be   : > { %v2540_v28 = vsel %vm513_vm0, %v1531_v20, 0  ;;  %v1530_v17 = vsub.f32 %v1013_v23, %v1521_v25  ;;  %v3176_v23 = vsub.f32 %v10957_v46, %v10977_v60 }
 0x1bf   : > { %v10945_v30 = vand.u32 4294901760, %v2540_v28  ;;  %v9333_v22 = vpop.f32.mrf.mxu1 }
 0x1c0   : > { %v9340_v31 = vpop.f32.mrf.mxu0  ;;  %v2537_v32 = vsel %vm513_vm0, %v1530_v17, 0  ;;  %v1703_v33 = vadd.f32 %v9333_v22, %v9326_v8 }
 0x1c1   : > { %v10949_v34 = vsub.f32 %v2540_v28, %v10945_v30  ;;  %v10951_v24 = vand.u32 4294901760, %v2537_v32  ;;  %v1696_v36 = vpop.f32.mrf.mxu1 }
 0x1c2   : > { %v1778_v40 = vpop.f32.mrf.mxu0  ;;  %v1786_v41 = vadd.f32 %v9340_v31, %v1703_v33  ;;  %v1697_v42 = vadd.f32 %v1696_v36, %v1605_v15  ;;  %v11004_v33 = vand.u32 4294901760, %v3176_v23 }
 0x1c3   : > { %v10960_v48 = vsub.f32 %v2537_v32, %v10951_v24  ;;  %9415 = vmatprep.mubr.f32.mxu1 %v10951_v24  ;;  %v10964_v50 = vand.u32 4294901760, %v10949_v34 }
 0x1c4   : > { %v1779_v51 = vadd.f32 %v1778_v40, %v1697_v42  ;;  %9416 = vmatmul.mubr.f32.vlgmr.msra.gmra.mxu1 %v10945_v30  ;;  %11727 = vst [vmem:[#allocation43_spill] sm:$0xff] %v11004_v33 }
 0x1c5   : > { %v9347_v52 = vpop.f32.mrf.mxu1  ;;  %9426 = vmatpush3.msra.mxu1 %v10903_v61  ;;  %v10969_v54 = vand.u32 4294901760, %v10960_v48  ;;  %v2622_v58 = vsub.f32 %v10949_v34, %v10964_v50 }
 0x1c6   : > { %v9354_v53 = vpop.f32.mrf.mxu0  ;;  %v1869_v56 = vadd.f32 %v9347_v52, %v1786_v41  ;;  %9427 = vmatprep.subr.mxu1 %v10908_v0 }
 0x1c7   : > { %v1860_v62 = vpop.f32.mrf.mxu1  ;;  %9428 = vmatpush3.msra.mxu1 %v10908_v0  ;;  %9429 = vmatprep.mubr.f32.mxu1 %v10969_v54  ;;  %v2612_v6 = vsub.f32 %v10960_v48, %v10969_v54  ;;  %v10990_v15 = vand.u32 4294901760, %v2622_v58 }
 0x1c8   : > { %v1945_v3 = vpop.f32.mrf.mxu0  ;;  %v1952_v8 = vadd.f32 %v9354_v53, %v1869_v56  ;;  %v1861_v9 = vadd.f32 %v1860_v62, %v1779_v51  ;;  %9430 = vmatmul.mubr.f32.vlgmr.msra.gmra.mxu1 %v10964_v50  ;;  %9439 = vmatprep.subr.mxu1 %v10903_v61 }
 0x1c9   : > { %9440 = vmatpush3.msra.mxu1 %v10903_v61  ;;  %9443 = vmatprep.mubr.f32.mxu1 %v10951_v24  ;;  %v10987_v10 = vand.u32 4294901760, %v2612_v6 }
 0x1ca   : > { %v1946_v14 = vadd.f32 %v1945_v3, %v1861_v9  ;;  %9441 = vmatprep.subr.mxu1 %v10908_v0 }
 0x1cb   : > { %v9361_v20 = vpop.f32.mrf.mxu1  ;;  %9408 = vmatprep.mubr.f32.mxu0 %v10987_v10  ;;  %9442 = vmatpush3.msra.mxu1 %v10908_v0 }
 0x1cc   : > { %v9368_v25 = vpop.f32.mrf.mxu0  ;;  %v2031_v28 = vadd.f32 %v9361_v20, %v1952_v8  ;;  %9409 = vmatmul.mubr.f32.vlgmr.msra.gmra.mxu0 %v10990_v15  ;;  %9444 = vmatmul.mubr.f32.vlgmr.msra.gmra.mxu1 %v10945_v30 }
 0x1cd   : > { %v2024_v17 = vpop.f32.mrf.mxu1  ;;  %9419 = vmatpush3.msra.mxu0 %v10906_v63  ;;  %9422 = vmatprep.mubr.f32.mxu0 %v10960_v48 }
 0x1ce   : > { %v2107_v22 = vpop.f32.mrf.mxu0  ;;  %v2118_v31 = vadd.f32 %v9368_v25, %v2031_v28  ;;  %v2025_v32 = vadd.f32 %v2024_v17, %v1946_v14  ;;  %9420 = vmatprep.subr.mxu0 %v10916_v2  ;;  %9453 = vmatprep.subr.mxu1 %v10992_v16 }
 0x1cf   : > { %9421 = vmatpush3.msra.mxu0 %v10916_v2  ;;  %9454 = vmatpush3.msra.mxu1 %v10992_v16 }
 0x1d0   : > { %v2108_v36 = vadd.f32 %v2107_v22, %v2025_v32  ;;  %9423 = vmatmul.mubr.f32.vlgmr.msra.gmra.mxu0 %v10949_v34  ;;  %9432 = vmatprep.subr.mxu0 %v10913_v1 }
 0x1d1   : > { %v9375_v40 = vpop.f32.mrf.mxu1  ;;  %9433 = vmatpush3.msra.mxu0 %v10913_v1  ;;  %9436 = vmatprep.mubr.f32.mxu0 %v10951_v24 }
 0x1d2   : > { %v9382_v41 = vpop.f32.mrf.mxu0  ;;  %v2205_v42 = vadd.f32 %v9375_v40, %v2118_v31  ;;  %9434 = vmatprep.subr.mxu0 %v10923_v4  ;;  %9455 = vmatprep.subr.mxu1 %v11004_v33 }
 0x1d3   : > { %v2198_v51 = vpop.f32.mrf.mxu1  ;;  %9435 = vmatpush3.msra.mxu0 %v10923_v4  ;;  %9456 = vmatpush3.msra.mxu1 %v11004_v33 }
 0x1d4   : > { %v2280_v52 = vpop.f32.mrf.mxu0  ;;  %v2288_v53 = vadd.f32 %v9382_v41, %v2205_v42  ;;  %v2199_v56 = vadd.f32 %v2198_v51, %v2108_v36  ;;  %9437 = vmatmul.mubr.f32.vlgmr.msra.gmra.mxu0 %v10945_v30  ;;  %9467 = vmatprep.subr.mxu1 %v10937_v13 }
 0x1d5   : > { %9446 = vmatprep.subr.mxu0 %v10937_v13 }
 0x1d6   : > { %v2281_v58 = vadd.f32 %v2280_v52, %v2199_v56  ;;  %9447 = vmatpush3.msra.mxu0 %v10937_v13 }
 0x1d7   : > { %v9389_v59 = vpop.f32.mrf.mxu1  ;;  %9448 = vmatprep.subr.mxu0 %v10943_v21 }
 0x1d8   : > { %v9396_v62 = vpop.f32.mrf.mxu0  ;;  %v2371_v3 = vadd.f32 %v9389_v59, %v2288_v53  ;;  %9449 = vmatpush3.msra.mxu0 %v10943_v21 }
 0x1d9   : > { %v2362_v6 = vpop.f32.mrf.mxu1  ;;  %9460 = vmatprep.subr.mxu0 %v10941_v29 }
 0x1da   : > { %v2454_v8 = vadd.f32 %v9396_v62, %v2371_v3  ;;  %v2363_v9 = vadd.f32 %v2362_v6, %v2281_v58  ;;  %v2447_v14 = vpop.f32.mrf.mxu0 }
 0x1dc   : > { %v2448_v23 = vadd.f32 %v2447_v14, %v2363_v9  ;;  %v9403_v20 = vpop.f32.mrf.mxu1 }
 0x1dd   : > { %v2533_v25 = vadd.f32 %v9403_v20, %v2454_v8 }
 0x1de   : > { %v2526_v28 = vpop.f32.mrf.mxu1 }
 0x1df   : > { %v3048_v17 = vsel %vm513_vm0, %v2533_v25, 0  ;;  %v2527_v22 = vadd.f32 %v2526_v28, %v2448_v23 }
 0x1e0   : > { %v11024_v31 = vand.u32 4294901760, %v3048_v17 }
 0x1e1   : > { %v3045_v32 = vsel %vm513_vm0, %v2527_v22, 0 }
 0x1e2   : > { %v11028_v36 = vsub.f32 %v3048_v17, %v11024_v31  ;;  %v11030_v40 = vand.u32 4294901760, %v3045_v32 }
 0x1e4   : > { %v3118_v41 = vsub.f32 %v3045_v32, %v11030_v40  ;;  %9457 = vmatprep.mubr.f32.mxu1 %v11030_v40  ;;  %v3129_v42 = vand.u32 4294901760, %v11028_v36 }
 0x1e5   : > { %9458 = vmatmul.mubr.f32.vlgmr.msra.gmra.mxu1 %v11024_v31 }
 0x1e6   : > { %9468 = vmatpush3.msra.mxu1 %v10937_v13  ;;  %v3119_v51 = vand.u32 4294901760, %v3118_v41  ;;  %v3130_v52 = vsub.f32 %v11028_v36, %v3129_v42 }
 0x1e7   : > { %9469 = vmatprep.subr.mxu1 %v10943_v21 }
 0x1e8   : > { %9470 = vmatpush3.msra.mxu1 %v10943_v21  ;;  %9471 = vmatprep.mubr.f32.mxu1 %v3119_v51  ;;  %v3120_v53 = vsub.f32 %v3118_v41, %v3119_v51  ;;  %v3131_v58 = vand.u32 4294901760, %v3130_v52 }
 0x1e9   : > { %9472 = vmatmul.mubr.f32.vlgmr.msra.gmra.mxu1 %v3129_v42  ;;  %9481 = vmatprep.subr.mxu1 %v10937_v13 }
 0x1ea   : > { %9482 = vmatpush3.msra.mxu1 %v10937_v13  ;;  %9485 = vmatprep.mubr.f32.mxu1 %v11030_v40  ;;  %v3121_v56 = vand.u32 4294901760, %v3120_v53 }
 0x1eb   : > { %9483 = vmatprep.subr.mxu1 %v10943_v21 }
 0x1ec   : > { %9450 = vmatprep.mubr.f32.mxu0 %v3121_v56  ;;  %9484 = vmatpush3.msra.mxu1 %v10943_v21 }
 0x1ed   : > { %9451 = vmatmul.mubr.f32.vlgmr.msra.gmra.mxu0 %v3131_v58  ;;  %9486 = vmatmul.mubr.f32.vlgmr.msra.gmra.mxu1 %v11024_v31 }
 0x1ee   : > { %9495 = vmatprep.subr.mxu1 %v10926_v5  ;;  %9461 = vmatpush3.msra.mxu0 %v10941_v29 }
 0x1ef   : > { %9464 = vmatprep.mubr.f32.mxu0 %v3118_v41  ;;  %9496 = vmatpush3.msra.mxu1 %v10926_v5 }
 0x1f0   : > { %9499 = vmatprep.mubr.f32.mxu1 %v11030_v40  ;;  %9462 = vmatprep.subr.mxu0 %v10957_v46 }
 0x1f1   : > { %9497 = vmatprep.subr.mxu1 %v10931_v7  ;;  %9463 = vmatpush3.msra.mxu0 %v10957_v46 }
 0x1f2   : > { %9498 = vmatpush3.msra.mxu1 %v10931_v7  ;;  %9465 = vmatmul.mubr.f32.vlgmr.msra.gmra.mxu0 %v11028_v36 }
 0x1f3   : > { %9474 = vmatprep.subr.mxu0 %v10954_v43  ;;  %9500 = vmatmul.mubr.f32.vlgmr.msra.gmra.mxu1 %v11024_v31 }
 0x1f4   : > { %9509 = vmatprep.subr.mxu1 %v10903_v61  ;;  %9475 = vmatpush3.msra.mxu0 %v10954_v43 }
 0x1f5   : > { %9478 = vmatprep.mubr.f32.mxu0 %v11030_v40  ;;  %9510 = vmatpush3.msra.mxu1 %v10903_v61 }
 0x1f6   : > { %9513 = vmatprep.mubr.f32.mxu1 %v3119_v51  ;;  %9476 = vmatprep.subr.mxu0 %v10977_v60 }
 0x1f7   : > { %9511 = vmatprep.subr.mxu1 %v10908_v0  ;;  %9477 = vmatpush3.msra.mxu0 %v10977_v60 }
 0x1f8   : > { %9512 = vmatpush3.msra.mxu1 %v10908_v0  ;;  %9479 = vmatmul.mubr.f32.vlgmr.msra.gmra.mxu0 %v11024_v31 }
 0x1f9   : > { %9488 = vmatprep.subr.mxu0 %v10903_v61  ;;  %9514 = vmatmul.mubr.f32.vlgmr.msra.gmra.mxu1 %v3129_v42 }
 0x1fa   : > { %9523 = vmatprep.subr.mxu1 %v10903_v61  ;;  %9489 = vmatpush3.msra.mxu0 %v10903_v61 }
 0x1fb   : > { %9492 = vmatprep.mubr.f32.mxu0 %v3121_v56  ;;  %9524 = vmatpush3.msra.mxu1 %v10903_v61 }
 0x1fc   : > { %9527 = vmatprep.mubr.f32.mxu1 %v11030_v40  ;;  %9490 = vmatprep.subr.mxu0 %v10908_v0 }
 0x1fd   : > { %9525 = vmatprep.subr.mxu1 %v10908_v0  ;;  %9491 = vmatpush3.msra.mxu0 %v10908_v0 }
 0x1fe   : > { %9526 = vmatpush3.msra.mxu1 %v10908_v0  ;;  %9493 = vmatmul.mubr.f32.vlgmr.msra.gmra.mxu0 %v3131_v58 }
 0x1ff   : > { %9502 = vmatprep.subr.mxu0 %v10906_v63  ;;  %9528 = vmatmul.mubr.f32.vlgmr.msra.gmra.mxu1 %v11024_v31 }
 0x200   : > { %9537 = vmatprep.subr.mxu1 %v10992_v16  ;;  %9503 = vmatpush3.msra.mxu0 %v10906_v63 }
 0x201   : > { %9506 = vmatprep.mubr.f32.mxu0 %v3118_v41  ;;  %9538 = vmatpush3.msra.mxu1 %v10992_v16 }
 0x202   : > { %9541 = vmatprep.mubr.f32.mxu1 %v10951_v24  ;;  %9504 = vmatprep.subr.mxu0 %v10916_v2 }
 0x203   : > { %9539 = vmatprep.subr.mxu1 %v11004_v33  ;;  %9505 = vmatpush3.msra.mxu0 %v10916_v2 }
 0x204   : > { %9540 = vmatpush3.msra.mxu1 %v11004_v33  ;;  %9507 = vmatmul.mubr.f32.vlgmr.msra.gmra.mxu0 %v11028_v36 }
 0x205   : > { %9516 = vmatprep.subr.mxu0 %v10913_v1  ;;  %9542 = vmatmul.mubr.f32.vlgmr.msra.gmra.mxu1 %v10945_v30 }
 0x206   : > { %9551 = vmatprep.subr.mxu1 %v10937_v13  ;;  %9517 = vmatpush3.msra.mxu0 %v10913_v1 }
 0x207   : > { %9520 = vmatprep.mubr.f32.mxu0 %v11030_v40  ;;  %9552 = vmatpush3.msra.mxu1 %v10937_v13 }
 0x208   : > { %9555 = vmatprep.mubr.f32.mxu1 %v10969_v54  ;;  %9518 = vmatprep.subr.mxu0 %v10923_v4 }
 0x209   : > { %9553 = vmatprep.subr.mxu1 %v10943_v21  ;;  %9519 = vmatpush3.msra.mxu0 %v10923_v4 }
 0x20a   : > { %9554 = vmatpush3.msra.mxu1 %v10943_v21  ;;  %9521 = vmatmul.mubr.f32.vlgmr.msra.gmra.mxu0 %v11024_v31 }
 0x20b   : > { %9530 = vmatprep.subr.mxu0 %v10937_v13  ;;  %9556 = vmatmul.mubr.f32.vlgmr.msra.gmra.mxu1 %v10964_v50 }
 0x20c   : > { %9565 = vmatprep.subr.mxu1 %v10937_v13  ;;  %9531 = vmatpush3.msra.mxu0 %v10937_v13 }
 0x20d   : > { %9534 = vmatprep.mubr.f32.mxu0 %v10987_v10  ;;  %9566 = vmatpush3.msra.mxu1 %v10937_v13 }
 0x20e   : > { %9569 = vmatprep.mubr.f32.mxu1 %v10951_v24  ;;  %9532 = vmatprep.subr.mxu0 %v10943_v21 }
 0x20f   : > { %9567 = vmatprep.subr.mxu1 %v10943_v21  ;;  %9533 = vmatpush3.msra.mxu0 %v10943_v21 }
 0x210   : > { %9568 = vmatpush3.msra.mxu1 %v10943_v21  ;;  %9535 = vmatmul.mubr.f32.vlgmr.msra.gmra.mxu0 %v10990_v15 }
 0x211   : > { %9544 = vmatprep.subr.mxu0 %v10941_v29  ;;  %9570 = vmatmul.mubr.f32.vlgmr.msra.gmra.mxu1 %v10945_v30 }
 0x212   : > { %9545 = vmatpush3.msra.mxu0 %v10941_v29  ;;  %9548 = vmatprep.mubr.f32.mxu0 %v10960_v48 }
 0x213   : > { %9546 = vmatprep.subr.mxu0 %v10957_v46  ;;  %9583 = vmatprep.mubr.f32.mxu1 %v10707_v35 }
 0x214   : > { %9547 = vmatpush3.msra.mxu0 %v10957_v46 }
 0x215   : > { %9549 = vmatmul.mubr.f32.vlgmr.msra.gmra.mxu0 %v10949_v34  ;;  %9558 = vmatprep.subr.mxu0 %v10954_v43 }
 0x216   : > { %9559 = vmatpush3.msra.mxu0 %v10954_v43  ;;  %9562 = vmatprep.mubr.f32.mxu0 %v10951_v24 }
 0x217   : > { %9560 = vmatprep.subr.mxu0 %v10977_v60 }
 0x218   : > { %9561 = vmatpush3.msra.mxu0 %v10977_v60 }
 0x219   : > { %9563 = vmatmul.mubr.f32.vlgmr.msra.gmra.mxu0 %v10945_v30 }
 0x21a   : > { %9576 = vmatprep.mubr.f32.mxu0 %v10781_v55  ;;  %v4572_v55 = vld [vmem:[%s10648_s25 + $0x8] sm:$0xff] }
 0x284   : > { %v9417_v48 = vpop.f32.mrf.mxu1 }
 0x286   : > { %v2706_v50 = vpop.f32.mrf.mxu1 }
 0x288   : > { %v11125_v54 = vpop.f32.mrf.mxu1 }
 0x28a   : > { %v11127_v34 = vpop.f32.mrf.mxu1 }
 0x28c   : > { %v9410_v10 = vpop.f32.mrf.mxu0  ;;  %v11129_v59 = vpop.f32.mrf.mxu1 }
 0x28d   : > { %v2713_v33 = vadd.f32 %v9417_v48, %v9410_v10 }
 0x28e   : > { %v2615_v15 = vpop.f32.mrf.mxu0  ;;  %v11131_v24 = vpop.f32.mrf.mxu1 }
 0x290   : > { %v9424_v62 = vpop.f32.mrf.mxu0 }
 0x292   : > { %v2788_v3 = vpop.f32.mrf.mxu0 }
 0x294   : > { %v11133_v8 = vpop.f32.mrf.mxu0 }
 0x296   : > { %v11135_v14 = vpop.f32.mrf.mxu0 }
 0x2a5   : > { %v9459_v6 = vpop.f32.mrf.mxu1 }
 0x2a7   : > { %v3214_v30 = vpop.f32.mrf.mxu1 }
 0x2a9   : > { %v9473_v9 = vpop.f32.mrf.mxu1 }
 0x2ab   : > { %v3378_v23 = vpop.f32.mrf.mxu1 }
 0x2ad   : > { %v9452_v20 = vpop.f32.mrf.mxu0  ;;  %v11137_v25 = vpop.f32.mrf.mxu1 }
 0x2ae   : > { %v3221_v5 = vadd.f32 %v9459_v6, %v9452_v20 }
 0x2af   : > { %v3123_v28 = vpop.f32.mrf.mxu0  ;;  %v11139_v17 = vpop.f32.mrf.mxu1 }
 0x2b0   : > { %v3215_v21 = vadd.f32 %v3214_v30, %v3123_v28 }
 0x2b2   : > { %v9466_v22 = vpop.f32.mrf.mxu0 }
 0x2b3   : > { %v9501_v31 = vpop.f32.mrf.mxu1  ;;  %v3304_v13 = vadd.f32 %v9466_v22, %v3221_v5 }
 0x2b4   : > { %v3296_v32 = vpop.f32.mrf.mxu0 }
 0x2b5   : > { %v3718_v36 = vpop.f32.mrf.mxu1 }
 0x2b8   : > { %v9480_v40 = vpop.f32.mrf.mxu0 }
 0x2b9   : > { %v9515_v41 = vpop.f32.mrf.mxu1 }
 0x2ba   : > { %v3463_v42 = vpop.f32.mrf.mxu0 }
 0x2bb   : > { %v3882_v51 = vpop.f32.mrf.mxu1 }
 0x2be   : > { %v9494_v52 = vpop.f32.mrf.mxu0 }
 0x2bf   : > { %v9529_v56 = vpop.f32.mrf.mxu1  ;;  %v3725_v58 = vadd.f32 %v9501_v31, %v9494_v52 }
 0x2c0   : > { %v3627_v53 = vpop.f32.mrf.mxu0 }
 0x2c1   : > { %v3719_v1 = vadd.f32 %v3718_v36, %v3627_v53  ;;  %v4046_v2 = vpop.f32.mrf.mxu1  ;;  %v2707_v36 = vadd.f32 %v2706_v50, %v2615_v15  ;;  %v2796_v53 = vadd.f32 %v9424_v62, %v2713_v33 }
 0x2c3   : > { %v2879_v48 = vadd.f32 %v11125_v54, %v2796_v53 }
 0x2c4   : > { %v9508_v4 = vpop.f32.mrf.mxu0 }
 0x2c5   : > { %v3808_v63 = vadd.f32 %v9508_v4, %v3725_v58  ;;  %v9543_v43 = vpop.f32.mrf.mxu1  ;;  %v3297_v4 = vadd.f32 %v3296_v32, %v3215_v21  ;;  %v4571_v58 = vld [vmem:[%s10648_s25] sm:$0xff] }
 0x2c6   : > { %v3800_v0 = vpop.f32.mrf.mxu0 }
 0x2c7   : > { %v3801_v60 = vadd.f32 %v3800_v0, %v3719_v1  ;;  %v3891_v61 = vadd.f32 %v9515_v41, %v3808_v63  ;;  %v4220_v31 = vpop.f32.mrf.mxu1  ;;  %v4574_v63 = vadd.f32 0.5, %v4572_v55  ;;  %v2789_v41 = vadd.f32 %v2788_v3, %v2707_v36 }
 0x2c8   : > { %v3379_v5 = vadd.f32 %v3378_v23, %v3297_v4 }
 0x2c9   : > { %v3883_v7 = vadd.f32 %v3882_v51, %v3801_v60  ;;  %v3387_v60 = vadd.f32 %v9473_v9, %v3304_v13  ;;  %10014 = vrcp.f32 %v4574_v63  ;;  %v2962_v13 = vadd.f32 %v11133_v8, %v2879_v48 }
 0x2ca   : > { %v9522_v46 = vpop.f32.mrf.mxu0  ;;  %v3464_v33 = vadd.f32 %v3463_v42, %v3379_v5 }
 0x2cb   : > { %v3974_v29 = vadd.f32 %v9522_v46, %v3891_v61  ;;  %v9557_v51 = vpop.f32.mrf.mxu1  ;;  %v4573_v61 = vadd.f32 0.5, %v4571_v58  ;;  %v3041_v23 = vadd.f32 %v11129_v59, %v2962_v13  ;;  %v4559_v59 = vld [vmem:[%s425_s11 + $0x8] sm:$0xff] }
 0x2cc   : > { %v3967_v16 = vpop.f32.mrf.mxu0  ;;  %v3543_v20 = vadd.f32 %v11139_v17, %v3464_v33 }
 0x2cd   : > { %v3968_v52 = vadd.f32 %v3967_v16, %v3883_v7  ;;  %v4053_v27 = vadd.f32 %v9529_v56, %v3974_v29  ;;  %v2871_v7 = vadd.f32 %v11127_v34, %v2789_v41  ;;  %v3470_v29 = vadd.f32 %v9480_v40, %v3387_v60  ;;  %v4384_v21 = vpop.f32.mrf.mxu1  ;;  %v8839_v56 = vld [vmem:[%s425_s11 + $0x18] sm:$0xff]  ;;  %v4558_v41 = vld [vmem:[%s425_s11] sm:$0xff] }
 0x2ce   : > { %10016 = vrcp.f32 %v4573_v61 }
 0x2cf   : > { %v4047_v0 = vadd.f32 %v4046_v2, %v3968_v52  ;;  %v2956_v54 = vadd.f32 %v11135_v14, %v2871_v7  ;;  %v8838_v52 = vld [vmem:[%s425_s11 + $0x10] sm:$0xff] }
 0x2d0   : > { %v9536_v1 = vpop.f32.mrf.mxu0 }
 0x2d1   : > { %v4140_v6 = vadd.f32 %v9536_v1, %v4053_v27  ;;  %v9571_v62 = vpop.f32.mrf.mxu1  ;;  %v3035_v32 = vadd.f32 %v11131_v24, %v2956_v54 }
 0x2d2   : > { %v4129_v46 = vpop.f32.mrf.mxu0 }
 0x2d3   : > { %v4130_v10 = vadd.f32 %v4129_v46, %v4047_v0  ;;  %v4227_v30 = vadd.f32 %v9543_v43, %v4140_v6  ;;  %v3549_v43 = vadd.f32 %v11137_v25, %v3470_v29  ;;  %v4548_v42 = vpop.f32.mrf.mxu1  ;;  %v3552_v25 = vsub.f32 %v3035_v32, %v3543_v20 }
 0x2d5   : > { %v9550_v16 = vpop.f32.mrf.mxu0  ;;  %v4221_v2 = vadd.f32 %v4220_v31, %v4130_v10  ;;  %v3553_v40 = vsub.f32 %v3041_v23, %v3549_v43  ;;  %v4560_v1 = vmul.f32 0.5, %v3552_v25 }
 0x2d6   : > { %v4310_v55 = vadd.f32 %v9550_v16, %v4227_v30  ;;  %v10015_v4 = vpop.eup %10014 }
 0x2d7   : > { %v4302_v27 = vpop.f32.mrf.mxu0  ;;  %v4561_v58 = vmul.f32 0.5, %v3553_v40  ;;  %v4562_v46 = vadd.f32 %v4560_v1, %v4558_v41 }
 0x2d8   : > { %v4303_v50 = vadd.f32 %v4302_v27, %v4221_v2  ;;  %v4393_v15 = vadd.f32 %v9557_v51, %v4310_v55 }
 0x2d9   : > { %v9564_v3 = vpop.f32.mrf.mxu0  ;;  %v4563_v51 = vadd.f32 %v4561_v58, %v4559_v59 }
 0x2da   : > { %v4476_v34 = vadd.f32 %v9564_v3, %v4393_v15  ;;  %v4385_v9 = vadd.f32 %v4384_v21, %v4303_v50 }
 0x2db   : > { %v4469_v28 = vpop.f32.mrf.mxu0  ;;  %v10017_v63 = vpop.eup %10016  ;;  %v4580_v10 = vmul.f32 %v10015_v4, %v4563_v51 }
 0x2dc   : > { %v4555_v22 = vadd.f32 %v9571_v62, %v4476_v34  ;;  %v4470_v8 = vadd.f32 %v4469_v28, %v4385_v9  ;;  %v4579_v29 = vmul.f32 %v10017_v63, %v4562_v46  ;;  %v11728_v34 = vld [vmem:[#allocation26_spill] sm:$0xff] }
 0x2dd   : > { %v11183_v2 = vand.u32 4294901760, %v4580_v10 }
 0x2de   : > { %v4568_v14 = vmul.f32 0.5, %v4555_v22  ;;  %v4549_v31 = vadd.f32 %v4548_v42, %v4470_v8  ;;  %v11190_v13 = vand.u32 4294901760, %v4579_v29 }
 0x2df   : > { %v11197_v33 = vsub.f32 %v4580_v10, %v11183_v2 }
 0x2e0   : > { %v4570_v36 = vadd.f32 %v8839_v56, %v4568_v14  ;;  %v4567_v53 = vmul.f32 0.5, %v4549_v31  ;;  %v11204_v27 = vsub.f32 %v4579_v29, %v11190_v13 }
 0x2e1   : > { %v11213_v50 = vand.u32 4294901760, %v11197_v33 }
 0x2e2   : > { %v4582_v0 = vmul.f32 %v10015_v4, %v4570_v36  ;;  %v4569_v17 = vadd.f32 %v8838_v52, %v4567_v53  ;;  %v11220_v15 = vand.u32 4294901760, %v11204_v27 }
 0x2e3   : > { %v5204_v54 = vsub.f32 %v11197_v33, %v11213_v50 }
 0x2e4   : > { %v11152_v60 = vand.u32 4294901760, %v4582_v0  ;;  %v4581_v24 = vmul.f32 %v10017_v63, %v4569_v17  ;;  %v5211_v43 = vsub.f32 %v11204_v27, %v11220_v15 }
 0x2e5   : > { %v11238_v62 = vand.u32 4294901760, %v5204_v54 }
 0x2e6   : > { %v11155_v6 = vsub.f32 %v4582_v0, %v11152_v60  ;;  %v11157_v61 = vand.u32 4294901760, %v4581_v24  ;;  %9572 = vmatprep.subr.mxu0 %v11152_v60  ;;  %v11244_v3 = vand.u32 4294901760, %v5211_v43 }
 0x2e7   : > { %9573 = vmatpush3.msra.mxu0 %v11152_v60 }
 0x2e8   : > { %v11162_v48 = vsub.f32 %v4581_v24, %v11157_v61  ;;  %9574 = vmatprep.subr.mxu0 %v11157_v61  ;;  %v11166_v5 = vand.u32 4294901760, %v11155_v6 }
 0x2e9   : > { %9575 = vmatpush3.msra.mxu0 %v11157_v61 }
 0x2ea   : > { %9586 = vmatprep.subr.mxu0 %v11155_v6  ;;  %9577 = vmatmul.mubr.f32.vlgmr.msra.gmra.mxu0 %v10787_v57  ;;  %v4702_v30 = vsub.f32 %v11155_v6, %v11166_v5  ;;  %v11174_v7 = vand.u32 4294901760, %v11162_v48 }
 0x2eb   : > { %9587 = vmatpush3.msra.mxu0 %v11155_v6  ;;  %9590 = vmatprep.mubr.f32.mxu0 %v10728_v44 }
 0x2ec   : > { %9588 = vmatprep.subr.mxu0 %v11162_v48  ;;  %v11179_v21 = vand.u32 4294901760, %v4702_v30  ;;  %v4709_v16 = vsub.f32 %v11162_v48, %v11174_v7 }
 0x2ed   : > { %9589 = vmatpush3.msra.mxu0 %v11162_v48 }
 0x2ee   : > { %9579 = vmatprep.subr.mxu1 %v11179_v21  ;;  %9600 = vmatprep.subr.mxu0 %v11166_v5  ;;  %v11188_v55 = vand.u32 4294901760, %v4709_v16 }
 0x2ef   : > { %9580 = vmatpush3.msra.mxu1 %v11179_v21  ;;  %9591 = vmatmul.mubr.f32.vlgmr.msra.gmra.mxu0 %v10733_v45 }
 0x2f0   : > { %9601 = vmatpush3.msra.mxu0 %v11166_v5  ;;  %9581 = vmatprep.subr.mxu1 %v11188_v55 }
 0x2f1   : > { %9602 = vmatprep.subr.mxu0 %v11174_v7  ;;  %9582 = vmatpush3.msra.mxu1 %v11188_v55 }
 0x2f2   : > { %9603 = vmatpush3.msra.mxu0 %v11174_v7  ;;  %9584 = vmatmul.mubr.f32.vlgmr.msra.gmra.mxu1 %v10711_v37 }
 0x2f3   : > { %9593 = vmatprep.subr.mxu1 %v11152_v60  ;;  %9604 = vmatprep.mubr.f32.mxu0 %v10707_v35 }
 0x2f4   : > { %9614 = vmatprep.subr.mxu0 %v11183_v2  ;;  %9594 = vmatpush3.msra.mxu1 %v11152_v60 }
 0x2f5   : > { %9605 = vmatmul.mubr.f32.vlgmr.msra.gmra.mxu0 %v10711_v37  ;;  %9595 = vmatprep.subr.mxu1 %v11157_v61 }
 0x2f6   : > { %9615 = vmatpush3.msra.mxu0 %v11183_v2  ;;  %9596 = vmatpush3.msra.mxu1 %v11157_v61 }
 0x2f7   : > { %9616 = vmatprep.subr.mxu0 %v11190_v13  ;;  %9597 = vmatprep.mubr.f32.mxu1 %v10745_v47 }
 0x2f8   : > { %9617 = vmatpush3.msra.mxu0 %v11190_v13  ;;  %9598 = vmatmul.mubr.f32.vlgmr.msra.gmra.mxu1 %v10753_v49 }
 0x2f9   : > { %9607 = vmatprep.subr.mxu1 %v11152_v60  ;;  %9618 = vmatprep.mubr.f32.mxu0 %v10713_v38 }
 0x2fa   : > { %9628 = vmatprep.subr.mxu0 %v11197_v33  ;;  %9608 = vmatpush3.msra.mxu1 %v11152_v60 }
 0x2fb   : > { %9619 = vmatmul.mubr.f32.vlgmr.msra.gmra.mxu0 %v10715_v39  ;;  %9609 = vmatprep.subr.mxu1 %v11157_v61 }
 0x2fc   : > { %9629 = vmatpush3.msra.mxu0 %v11197_v33  ;;  %9610 = vmatpush3.msra.mxu1 %v11157_v61 }
 0x2fd   : > { %9630 = vmatprep.subr.mxu0 %v11204_v27  ;;  %9611 = vmatprep.mubr.f32.mxu1 %v10707_v35 }
 0x2fe   : > { %9631 = vmatpush3.msra.mxu0 %v11204_v27  ;;  %9612 = vmatmul.mubr.f32.vlgmr.msra.gmra.mxu1 %v10711_v37 }
 0x2ff   : > { %9621 = vmatprep.subr.mxu1 %v11238_v62  ;;  %9632 = vmatprep.mubr.f32.mxu0 %v10671_v18 }
 0x300   : > { %9642 = vmatprep.subr.mxu0 %v11213_v50  ;;  %9622 = vmatpush3.msra.mxu1 %v11238_v62 }
 0x301   : > { %9633 = vmatmul.mubr.f32.vlgmr.msra.gmra.mxu0 %v10674_v19  ;;  %9623 = vmatprep.subr.mxu1 %v11244_v3 }
 0x302   : > { %9643 = vmatpush3.msra.mxu0 %v11213_v50  ;;  %9624 = vmatpush3.msra.mxu1 %v11244_v3 }
 0x303   : > { %9644 = vmatprep.subr.mxu0 %v11220_v15  ;;  %9625 = vmatprep.mubr.f32.mxu1 %v10663_v11 }
 0x304   : > { %9645 = vmatpush3.msra.mxu0 %v11220_v15  ;;  %9626 = vmatmul.mubr.f32.vlgmr.msra.gmra.mxu1 %v10665_v12 }
 0x305   : > { %9635 = vmatprep.subr.mxu1 %v11183_v2  ;;  %9646 = vmatprep.mubr.f32.mxu0 %v10663_v11 }
 0x306   : > { %9656 = vmatprep.subr.mxu0 %v11152_v60  ;;  %9636 = vmatpush3.msra.mxu1 %v11183_v2 }
 0x307   : > { %9647 = vmatmul.mubr.f32.vlgmr.msra.gmra.mxu0 %v10665_v12  ;;  %9637 = vmatprep.subr.mxu1 %v11190_v13 }
 0x308   : > { %9657 = vmatpush3.msra.mxu0 %v11152_v60  ;;  %9638 = vmatpush3.msra.mxu1 %v11190_v13 }
 0x309   : > { %9658 = vmatprep.subr.mxu0 %v11157_v61  ;;  %9639 = vmatprep.mubr.f32.mxu1 %v10687_v26 }
 0x30a   : > { %9659 = vmatpush3.msra.mxu0 %v11157_v61  ;;  %9640 = vmatmul.mubr.f32.vlgmr.msra.gmra.mxu1 %v11728_v34 }
 0x30b   : > { %9649 = vmatprep.subr.mxu1 %v11183_v2  ;;  %9660 = vmatprep.mubr.f32.mxu0 %v10713_v38  ;;  %v11734_v38 = vld [vmem:[#allocation37_spill] sm:$0xff] }
 0x30c   : > { %9670 = vmatprep.subr.mxu0 %v11155_v6  ;;  %9650 = vmatpush3.msra.mxu1 %v11183_v2 }
 0x30d   : > { %9661 = vmatmul.mubr.f32.vlgmr.msra.gmra.mxu0 %v10715_v39  ;;  %9651 = vmatprep.subr.mxu1 %v11190_v13 }
 0x30e   : > { %9671 = vmatpush3.msra.mxu0 %v11155_v6  ;;  %9652 = vmatpush3.msra.mxu1 %v11190_v13 }
 0x30f   : > { %9672 = vmatprep.subr.mxu0 %v11162_v48  ;;  %9653 = vmatprep.mubr.f32.mxu1 %v10663_v11 }
 0x310   : > { %9673 = vmatpush3.msra.mxu0 %v11162_v48  ;;  %9654 = vmatmul.mubr.f32.vlgmr.msra.gmra.mxu1 %v10665_v12 }
 0x311   : > { %9663 = vmatprep.subr.mxu1 %v11179_v21  ;;  %9674 = vmatprep.mubr.f32.mxu0 %v10671_v18  ;;  %v11729_v18 = vld [vmem:[#allocation27_spill] sm:$0xff] }
 0x312   : > { %9684 = vmatprep.subr.mxu0 %v11166_v5  ;;  %9664 = vmatpush3.msra.mxu1 %v11179_v21 }
 0x313   : > { %9675 = vmatmul.mubr.f32.vlgmr.msra.gmra.mxu0 %v10674_v19  ;;  %9665 = vmatprep.subr.mxu1 %v11188_v55  ;;  %v11732_v19 = vld [vmem:[#allocation42_spill] sm:$0xff] }
 0x314   : > { %9685 = vmatpush3.msra.mxu0 %v11166_v5  ;;  %9666 = vmatpush3.msra.mxu1 %v11188_v55 }
 0x315   : > { %9686 = vmatprep.subr.mxu0 %v11174_v7  ;;  %9667 = vmatprep.mubr.f32.mxu1 %v10663_v11 }
 0x316   : > { %9687 = vmatpush3.msra.mxu0 %v11174_v7  ;;  %9668 = vmatmul.mubr.f32.vlgmr.msra.gmra.mxu1 %v10665_v12 }
 0x317   : > { %9677 = vmatprep.subr.mxu1 %v11152_v60  ;;  %9688 = vmatprep.mubr.f32.mxu0 %v10663_v11 }
 0x318   : > { %9698 = vmatprep.subr.mxu0 %v11183_v2  ;;  %9678 = vmatpush3.msra.mxu1 %v11152_v60 }
 0x319   : > { %9689 = vmatmul.mubr.f32.vlgmr.msra.gmra.mxu0 %v10665_v12  ;;  %9679 = vmatprep.subr.mxu1 %v11157_v61 }
 0x31a   : > { %9699 = vmatpush3.msra.mxu0 %v11183_v2  ;;  %9680 = vmatpush3.msra.mxu1 %v11157_v61 }
 0x31b   : > { %9700 = vmatprep.subr.mxu0 %v11190_v13  ;;  %9681 = vmatprep.mubr.f32.mxu1 %v10687_v26  ;;  %v11733_v26 = vld [vmem:[#allocation43_spill] sm:$0xff] }
 0x31c   : > { %9701 = vmatpush3.msra.mxu0 %v11190_v13  ;;  %9682 = vmatmul.mubr.f32.vlgmr.msra.gmra.mxu1 %v11728_v34 }
 0x31d   : > { %9691 = vmatprep.subr.mxu1 %v11152_v60  ;;  %9702 = vmatprep.mubr.f32.mxu0 %v11729_v18 }
 0x31e   : > { %9712 = vmatprep.subr.mxu0 %v11197_v33  ;;  %9692 = vmatpush3.msra.mxu1 %v11152_v60 }
 0x31f   : > { %9703 = vmatmul.mubr.f32.vlgmr.msra.gmra.mxu0 %v10787_v57  ;;  %9693 = vmatprep.subr.mxu1 %v11157_v61 }
 0x320   : > { %9713 = vmatpush3.msra.mxu0 %v11197_v33  ;;  %9694 = vmatpush3.msra.mxu1 %v11157_v61 }
 0x321   : > { %9714 = vmatprep.subr.mxu0 %v11204_v27  ;;  %9695 = vmatprep.mubr.f32.mxu1 %v10663_v11  ;;  %v11730_v11 = vld [vmem:[#allocation36_spill] sm:$0xff] }
 0x322   : > { %9715 = vmatpush3.msra.mxu0 %v11204_v27  ;;  %9696 = vmatmul.mubr.f32.vlgmr.msra.gmra.mxu1 %v10665_v12  ;;  %v11731_v12 = vld [vmem:[#allocation38_spill] sm:$0xff] }
 0x323   : > { %9705 = vmatprep.subr.mxu1 %v11238_v62  ;;  %9716 = vmatprep.mubr.f32.mxu0 %v10728_v44 }
 0x324   : > { %9726 = vmatprep.subr.mxu0 %v11213_v50  ;;  %9706 = vmatpush3.msra.mxu1 %v11238_v62 }
 0x325   : > { %9717 = vmatmul.mubr.f32.vlgmr.msra.gmra.mxu0 %v10733_v45  ;;  %9707 = vmatprep.subr.mxu1 %v11244_v3 }
 0x326   : > { %9727 = vmatpush3.msra.mxu0 %v11213_v50  ;;  %9708 = vmatpush3.msra.mxu1 %v11244_v3 }
 0x327   : > { %9728 = vmatprep.subr.mxu0 %v11220_v15  ;;  %9709 = vmatprep.mubr.f32.mxu1 %v10707_v35 }
 0x328   : > { %9729 = vmatpush3.msra.mxu0 %v11220_v15  ;;  %9710 = vmatmul.mubr.f32.vlgmr.msra.gmra.mxu1 %v10711_v37 }
 0x329   : > { %9719 = vmatprep.subr.mxu1 %v11183_v2  ;;  %9723 = vmatprep.mubr.f32.mxu1 %v10745_v47 }
 0x32a   : > { %9720 = vmatpush3.msra.mxu1 %v11183_v2  ;;  %9730 = vmatprep.mubr.f32.mxu0 %v10707_v35 }
 0x32b   : > { %9721 = vmatprep.subr.mxu1 %v11190_v13  ;;  %9731 = vmatmul.mubr.f32.vlgmr.msra.gmra.mxu0 %v10711_v37 }
 0x32c   : > { %9722 = vmatpush3.msra.mxu1 %v11190_v13  ;;  %9740 = vmatprep.subr.mxu0 %v11730_v11 }
 0x32d   : > { %9724 = vmatmul.mubr.f32.vlgmr.msra.gmra.mxu1 %v10753_v49  ;;  %9733 = vmatprep.subr.mxu1 %v11183_v2 }
 0x32e   : > { %9734 = vmatpush3.msra.mxu1 %v11183_v2  ;;  %9737 = vmatprep.mubr.f32.mxu1 %v10707_v35 }
 0x32f   : > { %9735 = vmatprep.subr.mxu1 %v11190_v13  ;;  %9741 = vmatpush3.msra.mxu0 %v11730_v11 }
 0x330   : > { %9736 = vmatpush3.msra.mxu1 %v11190_v13  ;;  %9742 = vmatprep.subr.mxu0 %v11731_v12 }
 0x331   : > { %9738 = vmatmul.mubr.f32.vlgmr.msra.gmra.mxu1 %v10711_v37  ;;  %9747 = vmatprep.subr.mxu1 %v11732_v19 }
 0x332   : > { %9748 = vmatpush3.msra.mxu1 %v11732_v19  ;;  %9743 = vmatpush3.msra.mxu0 %v11731_v12 }
 0x333   : > { %9749 = vmatprep.subr.mxu1 %v11733_v26  ;;  %9754 = vmatprep.subr.mxu0 %v11734_v38 }
 0x334   : > { %9750 = vmatpush3.msra.mxu1 %v11733_v26 }
 0x335   : > { %9761 = vmatprep.subr.mxu1 %v11730_v11 }
 0x3aa   : > { %v9578_v35 = vpop.f32.mrf.mxu0 }
 0x3ac   : > { %v4656_v39 = vpop.f32.mrf.mxu0 }
 0x3af   : > { %v9592_v44 = vpop.f32.mrf.mxu0 }
 0x3b1   : > { %v4829_v45 = vpop.f32.mrf.mxu0 }
 0x3b2   : > { %v9585_v47 = vpop.f32.mrf.mxu1 }
 0x3b3   : > { %v4754_v17 = vadd.f32 %v9585_v47, %v9578_v35 }
 0x3b4   : > { %v4747_v37 = vpop.f32.mrf.mxu1 }
 0x3b5   : > { %v9606_v49 = vpop.f32.mrf.mxu0  ;;  %v4748_v58 = vadd.f32 %v4747_v37, %v4656_v39  ;;  %v4837_v60 = vadd.f32 %v9592_v44, %v4754_v17 }
 0x3b7   : > { %v4996_v57 = vpop.f32.mrf.mxu0  ;;  %v4830_v63 = vadd.f32 %v4829_v45, %v4748_v58 }
 0x3b8   : > { %v9599_v9 = vpop.f32.mrf.mxu1 }
 0x3b9   : > { %v4920_v46 = vadd.f32 %v9599_v9, %v4837_v60 }
 0x3ba   : > { %v4911_v23 = vpop.f32.mrf.mxu1 }
 0x3bb   : > { %v9620_v20 = vpop.f32.mrf.mxu0  ;;  %v4912_v51 = vadd.f32 %v4911_v23, %v4830_v63  ;;  %v5003_v7 = vadd.f32 %v9606_v49, %v4920_v46 }
 0x3bd   : > { %v5158_v28 = vpop.f32.mrf.mxu0  ;;  %v4997_v5 = vadd.f32 %v4996_v57, %v4912_v51 }
 0x3be   : > { %v9613_v22 = vpop.f32.mrf.mxu1 }
 0x3bf   : > { %v5082_v55 = vadd.f32 %v9613_v22, %v5003_v7 }
 0x3c0   : > { %v5075_v8 = vpop.f32.mrf.mxu1 }
 0x3c1   : > { %v9634_v32 = vpop.f32.mrf.mxu0  ;;  %v5076_v29 = vadd.f32 %v5075_v8, %v4997_v5  ;;  %v5169_v54 = vadd.f32 %v9620_v20, %v5082_v55 }
 0x3c3   : > { %v5331_v40 = vpop.f32.mrf.mxu0  ;;  %v5159_v27 = vadd.f32 %v5158_v28, %v5076_v29 }
 0x3c4   : > { %v9627_v42 = vpop.f32.mrf.mxu1 }
 0x3c5   : > { %v5256_v47 = vadd.f32 %v9627_v42, %v5169_v54  ;;  %v11737_v54 = vld [vmem:[#allocation35_spill] sm:$0xff] }
 0x3c6   : > { %v5249_v56 = vpop.f32.mrf.mxu1 }
 0x3c7   : > { %v11352_v14 = vpop.f32.mrf.mxu0  ;;  %v5250_v3 = vadd.f32 %v5249_v56, %v5159_v27  ;;  %v11735_v27 = vld [vmem:[#allocation34_spill] sm:$0xff] }
 0x3c9   : > { %v11354_v31 = vpop.f32.mrf.mxu0  ;;  %v5332_v49 = vadd.f32 %v5331_v40, %v5250_v3  ;;  %v11739_v3 = vld [vmem:[#allocation28_spill] sm:$0xff] }
 0x3ca   : > { %v11356_v25 = vpop.f32.mrf.mxu1 }
 0x3cc   : > { %v5413_v52 = vpop.f32.mrf.mxu1 }
 0x3cd   : > { %v9662_v36 = vpop.f32.mrf.mxu0  ;;  %v5414_v56 = vadd.f32 %v5413_v52, %v5332_v49  ;;  %v11743_v49 = vld [vmem:[#allocation32_spill] sm:$0xff] }
 0x3cf   : > { %v5660_v53 = vpop.f32.mrf.mxu0 }
 0x3d0   : > { %v11358_v4 = vpop.f32.mrf.mxu1 }
 0x3d2   : > { %v11360_v59 = vpop.f32.mrf.mxu1 }
 0x3d3   : > { %v9676_v0 = vpop.f32.mrf.mxu0 }
 0x3d5   : > { %v5833_v1 = vpop.f32.mrf.mxu0 }
 0x3d6   : > { %v9669_v41 = vpop.f32.mrf.mxu1 }
 0x3d7   : > { %v5758_v16 = vadd.f32 %v9669_v41, %v9662_v36  ;;  %v5339_v36 = vadd.f32 %v9634_v32, %v5256_v47 }
 0x3d8   : > { %v5751_v24 = vpop.f32.mrf.mxu1 }
 0x3d9   : > { %v9690_v6 = vpop.f32.mrf.mxu0  ;;  %v5752_v13 = vadd.f32 %v5751_v24, %v5660_v53  ;;  %v5841_v15 = vadd.f32 %v9676_v0, %v5758_v16  ;;  %v5422_v42 = vadd.f32 %v11356_v25, %v5339_v36 }
 0x3db   : > { %v6000_v61 = vpop.f32.mrf.mxu0  ;;  %v5834_v43 = vadd.f32 %v5833_v1, %v5752_v13  ;;  %v5505_v52 = vadd.f32 %v11352_v14, %v5422_v42 }
 0x3dc   : > { %v9683_v48 = vpop.f32.mrf.mxu1 }
 0x3dd   : > { %v5924_v35 = vadd.f32 %v9683_v48, %v5841_v15  ;;  %v5584_v7 = vadd.f32 %v11358_v4, %v5505_v52  ;;  %v11736_v15 = vld [vmem:[#allocation40_spill] sm:$0xff] }
 0x3de   : > { %v5915_v10 = vpop.f32.mrf.mxu1 }
 0x3df   : > { %v9704_v30 = vpop.f32.mrf.mxu0  ;;  %v5916_v37 = vadd.f32 %v5915_v10, %v5834_v43  ;;  %v6007_v22 = vadd.f32 %v9690_v6, %v5924_v35  ;;  %v5499_v6 = vadd.f32 %v11354_v31, %v5414_v56  ;;  %v11740_v35 = vld [vmem:[#allocation41_spill] sm:$0xff] }
 0x3e1   : > { %v6162_v21 = vpop.f32.mrf.mxu0  ;;  %v6001_v20 = vadd.f32 %v6000_v61, %v5916_v37  ;;  %v5578_v5 = vadd.f32 %v11360_v59, %v5499_v6  ;;  %v11742_v37 = vld [vmem:[#allocation29_spill] sm:$0xff] }
 0x3e2   : > { %v9697_v2 = vpop.f32.mrf.mxu1 }
 0x3e3   : > { %v6086_v63 = vadd.f32 %v9697_v2, %v6007_v22  ;;  %v7102_v14 = vsel %vm513_vm0, %v5578_v5, 0 }
 0x3e4   : > { %v6079_v33 = vpop.f32.mrf.mxu1  ;;  %v11397_v16 = vand.u32 4294901760, %v7102_v14 }
 0x3e5   : > { %v9718_v50 = vpop.f32.mrf.mxu0  ;;  %v6080_v40 = vadd.f32 %v6079_v33, %v6001_v20 }
 0x3e6   : > { %v11413_v33 = vsub.f32 %v7102_v14, %v11397_v16 }
 0x3e7   : > { %v6335_v18 = vpop.f32.mrf.mxu0 }
 0x3e8   : > { %v9711_v62 = vpop.f32.mrf.mxu1  ;;  %v11429_v43 = vand.u32 4294901760, %v11413_v33 }
 0x3e9   : > { %v6260_v34 = vadd.f32 %v9711_v62, %v9704_v30  ;;  %v11738_v62 = vld [vmem:[#allocation39_spill] sm:$0xff] }
 0x3ea   : > { %v6253_v39 = vpop.f32.mrf.mxu1 }
 0x3eb   : > { %v6343_v44 = vadd.f32 %v9718_v50, %v6260_v34  ;;  %v6254_v45 = vadd.f32 %v6253_v39, %v6162_v21  ;;  %v9732_v23 = vpop.f32.mrf.mxu0  ;;  %v7105_v21 = vsel %vm513_vm0, %v5584_v7, 0  ;;  %v11741_v39 = vld [vmem:[#allocation30_spill] sm:$0xff] }
 0x3ec   : > { %v11408_v13 = vand.u32 4294901760, %v7105_v21 }
 0x3ed   : > { %v6336_v57 = vadd.f32 %v6335_v18, %v6254_v45  ;;  %v9725_v9 = vpop.f32.mrf.mxu1  ;;  %v6502_v0 = vpop.f32.mrf.mxu0  ;;  %v7177_v18 = vsub.f32 %v11413_v33, %v11429_v43 }
 0x3ee   : > { %v6426_v28 = vadd.f32 %v9725_v9, %v6343_v44  ;;  %v11422_v50 = vsub.f32 %v7105_v21, %v11408_v13  ;;  %v11745_v9 = vld [vmem:[#allocation33_spill] sm:$0xff] }
 0x3ef   : > { %v6417_v8 = vpop.f32.mrf.mxu1  ;;  %v11454_v45 = vand.u32 4294901760, %v7177_v18 }
 0x3f0   : > { %v6509_v53 = vadd.f32 %v9732_v23, %v6426_v28  ;;  %v6418_v58 = vadd.f32 %v6417_v8, %v6336_v57  ;;  %v11438_v34 = vand.u32 4294901760, %v11422_v50  ;;  %v11744_v57 = vld [vmem:[#allocation31_spill] sm:$0xff] }
 0x3f1   : > { %v9739_v17 = vpop.f32.mrf.mxu1 }
 0x3f2   : > { %v6503_v1 = vadd.f32 %v6502_v0, %v6418_v58  ;;  %v6588_v41 = vadd.f32 %v9739_v17, %v6509_v53  ;;  %v7187_v44 = vsub.f32 %v11422_v50, %v11438_v34 }
 0x3f3   : > { %v6581_v60 = vpop.f32.mrf.mxu1 }
 0x3f4   : > { %v6592_v24 = vsub.f32 %v6086_v63, %v6588_v41  ;;  %v6582_v51 = vadd.f32 %v6581_v60, %v6503_v1  ;;  %v11462_v47 = vand.u32 4294901760, %v7187_v44 }
 0x3f6   : > { %v6597_v46 = vsel %vm513_vm0, %v6592_v24, 0  ;;  %v6591_v32 = vsub.f32 %v6080_v40, %v6582_v51 }
 0x3f7   : > { %v11365_v61 = vand.u32 4294901760, %v6597_v46 }
 0x3f8   : > { %v6594_v48 = vsel %vm513_vm0, %v6591_v32, 0 }
 0x3f9   : > { %v11371_v10 = vsub.f32 %v6597_v46, %v11365_v61  ;;  %v11373_v25 = vand.u32 4294901760, %v6594_v48 }
 0x3fb   : > { %v11376_v30 = vsub.f32 %v6594_v48, %v11373_v25  ;;  %9751 = vmatprep.mubr.f32.mxu1 %v11373_v25  ;;  %v11380_v31 = vand.u32 4294901760, %v11371_v10 }
 0x3fc   : > { %9752 = vmatmul.mubr.f32.vlgmr.msra.gmra.mxu1 %v11365_v61 }
 0x3fd   : > { %9762 = vmatpush3.msra.mxu1 %v11730_v11  ;;  %v11387_v59 = vand.u32 4294901760, %v11376_v30  ;;  %v6679_v29 = vsub.f32 %v11371_v10, %v11380_v31 }
 0x3fe   : > { %9763 = vmatprep.subr.mxu1 %v11731_v12 }
 0x3ff   : > { %9764 = vmatpush3.msra.mxu1 %v11731_v12  ;;  %9765 = vmatprep.mubr.f32.mxu1 %v11387_v59  ;;  %v6669_v4 = vsub.f32 %v11376_v30, %v11387_v59  ;;  %v11406_v55 = vand.u32 4294901760, %v6679_v29 }
 0x400   : > { %9766 = vmatmul.mubr.f32.vlgmr.msra.gmra.mxu1 %v11380_v31  ;;  %9775 = vmatprep.subr.mxu1 %v11730_v11 }
 0x401   : > { %9776 = vmatpush3.msra.mxu1 %v11730_v11  ;;  %9779 = vmatprep.mubr.f32.mxu1 %v11373_v25  ;;  %v11403_v2 = vand.u32 4294901760, %v6669_v4 }
 0x402   : > { %9777 = vmatprep.subr.mxu1 %v11731_v12 }
 0x403   : > { %9744 = vmatprep.mubr.f32.mxu0 %v11403_v2  ;;  %9778 = vmatpush3.msra.mxu1 %v11731_v12 }
 0x404   : > { %9745 = vmatmul.mubr.f32.vlgmr.msra.gmra.mxu0 %v11406_v55  ;;  %9780 = vmatmul.mubr.f32.vlgmr.msra.gmra.mxu1 %v11365_v61 }
 0x405   : > { %9789 = vmatprep.subr.mxu1 %v11735_v27  ;;  %9755 = vmatpush3.msra.mxu0 %v11734_v38 }
 0x406   : > { %9758 = vmatprep.mubr.f32.mxu0 %v11376_v30  ;;  %9790 = vmatpush3.msra.mxu1 %v11735_v27 }
 0x407   : > { %9793 = vmatprep.mubr.f32.mxu1 %v11397_v16  ;;  %9756 = vmatprep.subr.mxu0 %v11736_v15 }
 0x408   : > { %9791 = vmatprep.subr.mxu1 %v11737_v54  ;;  %9757 = vmatpush3.msra.mxu0 %v11736_v15 }
 0x409   : > { %9792 = vmatpush3.msra.mxu1 %v11737_v54  ;;  %9759 = vmatmul.mubr.f32.vlgmr.msra.gmra.mxu0 %v11371_v10 }
 0x40a   : > { %9768 = vmatprep.subr.mxu0 %v11738_v62  ;;  %9794 = vmatmul.mubr.f32.vlgmr.msra.gmra.mxu1 %v11408_v13 }
 0x40b   : > { %9803 = vmatprep.subr.mxu1 %v11739_v3  ;;  %9769 = vmatpush3.msra.mxu0 %v11738_v62 }
 0x40c   : > { %9772 = vmatprep.mubr.f32.mxu0 %v11373_v25  ;;  %9804 = vmatpush3.msra.mxu1 %v11739_v3 }
 0x40d   : > { %9807 = vmatprep.mubr.f32.mxu1 %v11429_v43  ;;  %9770 = vmatprep.subr.mxu0 %v11740_v35 }
 0x40e   : > { %9805 = vmatprep.subr.mxu1 %v11741_v39  ;;  %9771 = vmatpush3.msra.mxu0 %v11740_v35 }
 0x40f   : > { %9806 = vmatpush3.msra.mxu1 %v11741_v39  ;;  %9773 = vmatmul.mubr.f32.vlgmr.msra.gmra.mxu0 %v11365_v61 }
 0x410   : > { %9782 = vmatprep.subr.mxu0 %v11739_v3  ;;  %9808 = vmatmul.mubr.f32.vlgmr.msra.gmra.mxu1 %v11438_v34 }
 0x411   : > { %9817 = vmatprep.subr.mxu1 %v11739_v3  ;;  %9783 = vmatpush3.msra.mxu0 %v11739_v3 }
 0x412   : > { %9786 = vmatprep.mubr.f32.mxu0 %v11454_v45  ;;  %9818 = vmatpush3.msra.mxu1 %v11739_v3 }
 0x413   : > { %9821 = vmatprep.mubr.f32.mxu1 %v11397_v16  ;;  %9784 = vmatprep.subr.mxu0 %v11741_v39 }
 0x414   : > { %9819 = vmatprep.subr.mxu1 %v11741_v39  ;;  %9785 = vmatpush3.msra.mxu0 %v11741_v39 }
 0x415   : > { %9820 = vmatpush3.msra.mxu1 %v11741_v39  ;;  %9787 = vmatmul.mubr.f32.vlgmr.msra.gmra.mxu0 %v11462_v47 }
 0x416   : > { %9796 = vmatprep.subr.mxu0 %v11742_v37  ;;  %9822 = vmatmul.mubr.f32.vlgmr.msra.gmra.mxu1 %v11408_v13 }
 0x417   : > { %9831 = vmatprep.subr.mxu1 %v11735_v27  ;;  %9797 = vmatpush3.msra.mxu0 %v11742_v37 }
 0x418   : > { %9800 = vmatprep.mubr.f32.mxu0 %v11413_v33  ;;  %9832 = vmatpush3.msra.mxu1 %v11735_v27 }
 0x419   : > { %9835 = vmatprep.mubr.f32.mxu1 %v11373_v25  ;;  %9798 = vmatprep.subr.mxu0 %v11743_v49 }
 0x41a   : > { %9833 = vmatprep.subr.mxu1 %v11737_v54  ;;  %9799 = vmatpush3.msra.mxu0 %v11743_v49 }
 0x41b   : > { %9834 = vmatpush3.msra.mxu1 %v11737_v54  ;;  %9801 = vmatmul.mubr.f32.vlgmr.msra.gmra.mxu0 %v11422_v50 }
 0x41c   : > { %9810 = vmatprep.subr.mxu0 %v11744_v57  ;;  %9836 = vmatmul.mubr.f32.vlgmr.msra.gmra.mxu1 %v11365_v61 }
 0x41d   : > { %9845 = vmatprep.subr.mxu1 %v11739_v3  ;;  %9811 = vmatpush3.msra.mxu0 %v11744_v57 }
 0x41e   : > { %9814 = vmatprep.mubr.f32.mxu0 %v11397_v16  ;;  %9846 = vmatpush3.msra.mxu1 %v11739_v3 }
 0x41f   : > { %9849 = vmatprep.mubr.f32.mxu1 %v11387_v59  ;;  %9812 = vmatprep.subr.mxu0 %v11745_v9 }
 0x420   : > { %9847 = vmatprep.subr.mxu1 %v11741_v39  ;;  %9813 = vmatpush3.msra.mxu0 %v11745_v9 }
 0x421   : > { %9848 = vmatpush3.msra.mxu1 %v11741_v39  ;;  %9815 = vmatmul.mubr.f32.vlgmr.msra.gmra.mxu0 %v11408_v13 }
 0x422   : > { %9824 = vmatprep.subr.mxu0 %v11739_v3  ;;  %9850 = vmatmul.mubr.f32.vlgmr.msra.gmra.mxu1 %v11380_v31 }
 0x423   : > { %9859 = vmatprep.subr.mxu1 %v11739_v3  ;;  %9825 = vmatpush3.msra.mxu0 %v11739_v3 }
 0x424   : > { %9828 = vmatprep.mubr.f32.mxu0 %v11403_v2  ;;  %9860 = vmatpush3.msra.mxu1 %v11739_v3 }
 0x425   : > { %9863 = vmatprep.mubr.f32.mxu1 %v11373_v25  ;;  %9826 = vmatprep.subr.mxu0 %v11741_v39 }
 0x426   : > { %9861 = vmatprep.subr.mxu1 %v11741_v39  ;;  %9827 = vmatpush3.msra.mxu0 %v11741_v39 }
 0x427   : > { %9862 = vmatpush3.msra.mxu1 %v11741_v39  ;;  %9829 = vmatmul.mubr.f32.vlgmr.msra.gmra.mxu0 %v11406_v55 }
 0x428   : > { %9838 = vmatprep.subr.mxu0 %v11742_v37  ;;  %9864 = vmatmul.mubr.f32.vlgmr.msra.gmra.mxu1 %v11365_v61 }
 0x429   : > { %9873 = vmatprep.subr.mxu1 %v11732_v19  ;;  %9839 = vmatpush3.msra.mxu0 %v11742_v37 }
 0x42a   : > { %9842 = vmatprep.mubr.f32.mxu0 %v11376_v30  ;;  %9874 = vmatpush3.msra.mxu1 %v11732_v19 }
 0x42b   : > { %9877 = vmatprep.mubr.f32.mxu1 %v11397_v16  ;;  %9840 = vmatprep.subr.mxu0 %v11743_v49 }
 0x42c   : > { %9875 = vmatprep.subr.mxu1 %v11733_v26  ;;  %9841 = vmatpush3.msra.mxu0 %v11743_v49 }
 0x42d   : > { %9876 = vmatpush3.msra.mxu1 %v11733_v26  ;;  %9843 = vmatmul.mubr.f32.vlgmr.msra.gmra.mxu0 %v11371_v10 }
 0x42e   : > { %9852 = vmatprep.subr.mxu0 %v11744_v57  ;;  %9878 = vmatmul.mubr.f32.vlgmr.msra.gmra.mxu1 %v11408_v13 }
 0x42f   : > { %9887 = vmatprep.subr.mxu1 %v11730_v11  ;;  %9853 = vmatpush3.msra.mxu0 %v11744_v57 }
 0x430   : > { %9856 = vmatprep.mubr.f32.mxu0 %v11373_v25  ;;  %9888 = vmatpush3.msra.mxu1 %v11730_v11 }
 0x431   : > { %9891 = vmatprep.mubr.f32.mxu1 %v11429_v43  ;;  %9854 = vmatprep.subr.mxu0 %v11745_v9 }
 0x432   : > { %9889 = vmatprep.subr.mxu1 %v11731_v12  ;;  %9855 = vmatpush3.msra.mxu0 %v11745_v9 }
 0x433   : > { %9890 = vmatpush3.msra.mxu1 %v11731_v12  ;;  %9857 = vmatmul.mubr.f32.vlgmr.msra.gmra.mxu0 %v11365_v61 }
 0x434   : > { %9866 = vmatprep.subr.mxu0 %v11730_v11  ;;  %9892 = vmatmul.mubr.f32.vlgmr.msra.gmra.mxu1 %v11438_v34 }
 0x435   : > { %9901 = vmatprep.subr.mxu1 %v11730_v11  ;;  %9867 = vmatpush3.msra.mxu0 %v11730_v11 }
 0x436   : > { %9870 = vmatprep.mubr.f32.mxu0 %v11454_v45  ;;  %9902 = vmatpush3.msra.mxu1 %v11730_v11 }
 0x437   : > { %9905 = vmatprep.mubr.f32.mxu1 %v11397_v16  ;;  %9868 = vmatprep.subr.mxu0 %v11731_v12 }
 0x438   : > { %9903 = vmatprep.subr.mxu1 %v11731_v12  ;;  %9869 = vmatpush3.msra.mxu0 %v11731_v12 }
 0x439   : > { %9904 = vmatpush3.msra.mxu1 %v11731_v12  ;;  %9871 = vmatmul.mubr.f32.vlgmr.msra.gmra.mxu0 %v11462_v47 }
 0x43a   : > { %9880 = vmatprep.subr.mxu0 %v11734_v38  ;;  %9906 = vmatmul.mubr.f32.vlgmr.msra.gmra.mxu1 %v11408_v13 }
 0x43b   : > { %9881 = vmatpush3.msra.mxu0 %v11734_v38  ;;  %9884 = vmatprep.mubr.f32.mxu0 %v11413_v33 }
 0x43c   : > { %9882 = vmatprep.subr.mxu0 %v11736_v15 }
 0x43d   : > { %9883 = vmatpush3.msra.mxu0 %v11736_v15 }
 0x43e   : > { %9885 = vmatmul.mubr.f32.vlgmr.msra.gmra.mxu0 %v11422_v50  ;;  %9894 = vmatprep.subr.mxu0 %v11738_v62 }
 0x43f   : > { %9895 = vmatpush3.msra.mxu0 %v11738_v62  ;;  %9898 = vmatprep.mubr.f32.mxu0 %v11397_v16 }
 0x440   : > { %9896 = vmatprep.subr.mxu0 %v11740_v35 }
 0x441   : > { %9897 = vmatpush3.msra.mxu0 %v11740_v35 }
 0x442   : > { %9899 = vmatmul.mubr.f32.vlgmr.msra.gmra.mxu0 %v11408_v13 }
 0x4bc   : > { %v9753_v11 = vpop.f32.mrf.mxu1 }
 0x4be   : > { %v6763_v12 = vpop.f32.mrf.mxu1 }
 0x4c0   : > { %v9767_v19 = vpop.f32.mrf.mxu1 }
 0x4c2   : > { %v6927_v26 = vpop.f32.mrf.mxu1 }
 0x4c4   : > { %v9746_v38 = vpop.f32.mrf.mxu0  ;;  %v9781_v23 = vpop.f32.mrf.mxu1 }
 0x4c5   : > { %v6770_v8 = vadd.f32 %v9753_v11, %v9746_v38 }
 0x4c6   : > { %v6672_v22 = vpop.f32.mrf.mxu0  ;;  %v7091_v28 = vpop.f32.mrf.mxu1 }
 0x4c7   : > { %v6764_v20 = vadd.f32 %v6763_v12, %v6672_v22 }
 0x4c9   : > { %v9760_v36 = vpop.f32.mrf.mxu0 }
 0x4ca   : > { %v6853_v53 = vadd.f32 %v9760_v36, %v6770_v8  ;;  %v9795_v58 = vpop.f32.mrf.mxu1 }
 0x4cb   : > { %v6845_v56 = vpop.f32.mrf.mxu0 }
 0x4cc   : > { %v6846_v0 = vadd.f32 %v6845_v56, %v6764_v20  ;;  %v7271_v17 = vpop.f32.mrf.mxu1  ;;  %v6936_v63 = vadd.f32 %v9767_v19, %v6853_v53 }
 0x4ce   : > { %v6928_v1 = vadd.f32 %v6927_v26, %v6846_v0 }
 0x4cf   : > { %v9774_v41 = vpop.f32.mrf.mxu0 }
 0x4d0   : > { %v7019_v60 = vadd.f32 %v9774_v41, %v6936_v63  ;;  %v9809_v42 = vpop.f32.mrf.mxu1 }
 0x4d1   : > { %v7012_v40 = vpop.f32.mrf.mxu0 }
 0x4d2   : > { %v7013_v24 = vadd.f32 %v7012_v40, %v6928_v1  ;;  %v7435_v51 = vpop.f32.mrf.mxu1  ;;  %v7098_v6 = vadd.f32 %v9781_v23, %v7019_v60 }
 0x4d4   : > { %v7092_v46 = vadd.f32 %v7091_v28, %v7013_v24 }
 0x4d5   : > { %v9788_v32 = vpop.f32.mrf.mxu0 }
 0x4d6   : > { %v7191_v61 = vadd.f32 %v9788_v32, %v7098_v6  ;;  %v9823_v52 = vpop.f32.mrf.mxu1 }
 0x4d7   : > { %v7180_v48 = vpop.f32.mrf.mxu0 }
 0x4d8   : > { %v7181_v5 = vadd.f32 %v7180_v48, %v7092_v46  ;;  %v7599_v10 = vpop.f32.mrf.mxu1  ;;  %v7278_v25 = vadd.f32 %v9795_v58, %v7191_v61 }
 0x4da   : > { %v7272_v30 = vadd.f32 %v7271_v17, %v7181_v5 }
 0x4db   : > { %v9802_v31 = vpop.f32.mrf.mxu0 }
 0x4dc   : > { %v7361_v7 = vadd.f32 %v9802_v31, %v7278_v25  ;;  %v9837_v14 = vpop.f32.mrf.mxu1 }
 0x4dd   : > { %v7353_v59 = vpop.f32.mrf.mxu0 }
 0x4de   : > { %v7354_v29 = vadd.f32 %v7353_v59, %v7272_v30  ;;  %v7775_v4 = vpop.f32.mrf.mxu1  ;;  %v7444_v21 = vadd.f32 %v9809_v42, %v7361_v7 }
 0x4e0   : > { %v7436_v16 = vadd.f32 %v7435_v51, %v7354_v29 }
 0x4e1   : > { %v9816_v2 = vpop.f32.mrf.mxu0 }
 0x4e2   : > { %v7527_v55 = vadd.f32 %v9816_v2, %v7444_v21  ;;  %v9851_v13 = vpop.f32.mrf.mxu1 }
 0x4e3   : > { %v7520_v33 = vpop.f32.mrf.mxu0 }
 0x4e4   : > { %v7606_v27 = vadd.f32 %v9823_v52, %v7527_v55  ;;  %v7521_v50 = vadd.f32 %v7520_v33, %v7436_v16  ;;  %v7939_v54 = vpop.f32.mrf.mxu1 }
 0x4e6   : > { %7610 = vst.msk [vmem:[%s11554_s14 + $0x8] sm:$0xff] %vm513_vm0, %v7606_v27  ;;  %v7600_v15 = vadd.f32 %v7599_v10, %v7521_v50 }
 0x4e7   : > { %v9830_v43 = vpop.f32.mrf.mxu0 }
 0x4e8   : > { %7609 = vst.msk [vmem:[%s11554_s14] sm:$0xff] %vm513_vm0, %v7600_v15  ;;  %v9865_v3 = vpop.f32.mrf.mxu1  ;;  %v7782_v37 = vadd.f32 %v9837_v14, %v9830_v43 }
 0x4e9   : > { %v7684_v62 = vpop.f32.mrf.mxu0 }
 0x4ea   : > { %v8103_v18 = vpop.f32.mrf.mxu1  ;;  %v7776_v49 = vadd.f32 %v7775_v4, %v7684_v62 }
 0x4ed   : > { %v9844_v34 = vpop.f32.mrf.mxu0 }
 0x4ee   : > { %v9879_v39 = vpop.f32.mrf.mxu1  ;;  %v7865_v57 = vadd.f32 %v9844_v34, %v7782_v37 }
 0x4ef   : > { %v7857_v35 = vpop.f32.mrf.mxu0 }
 0x4f0   : > { %v8277_v47 = vpop.f32.mrf.mxu1  ;;  %v7858_v12 = vadd.f32 %v7857_v35, %v7776_v49  ;;  %v7948_v26 = vadd.f32 %v9851_v13, %v7865_v57 }
 0x4f2   : > { %v7940_v28 = vadd.f32 %v7939_v54, %v7858_v12 }
 0x4f3   : > { %v9858_v44 = vpop.f32.mrf.mxu0 }
 0x4f4   : > { %v9893_v11 = vpop.f32.mrf.mxu1  ;;  %v8031_v53 = vadd.f32 %v9858_v44, %v7948_v26 }
 0x4f5   : > { %v8024_v45 = vpop.f32.mrf.mxu0 }
 0x4f6   : > { %v8441_v23 = vpop.f32.mrf.mxu1  ;;  %v8025_v63 = vadd.f32 %v8024_v45, %v7940_v28  ;;  %v8110_v42 = vadd.f32 %v9865_v3, %v8031_v53 }
 0x4f8   : > { %v8104_v6 = vadd.f32 %v8103_v18, %v8025_v63 }
 0x4f9   : > { %v9872_v9 = vpop.f32.mrf.mxu0 }
 0x4fa   : > { %v8284_v38 = vadd.f32 %v9879_v39, %v9872_v9  ;;  %v9907_v0 = vpop.f32.mrf.mxu1 }
 0x4fb   : > { %v8186_v19 = vpop.f32.mrf.mxu0 }
 0x4fc   : > { %v8278_v8 = vadd.f32 %v8277_v47, %v8186_v19  ;;  %v8605_v51 = vpop.f32.mrf.mxu1 }
 0x4fe   : > { %v9886_v22 = vpop.f32.mrf.mxu0 }
 0x4ff   : > { %v8367_v36 = vadd.f32 %v9886_v22, %v8284_v38 }
 0x500   : > { %v8359_v20 = vpop.f32.mrf.mxu0 }
 0x501   : > { %v8360_v58 = vadd.f32 %v8359_v20, %v8278_v8  ;;  %v8450_v56 = vadd.f32 %v9893_v11, %v8367_v36 }
 0x502   : > { %v9900_v17 = vpop.f32.mrf.mxu0 }
 0x503   : > { %v8533_v1 = vadd.f32 %v9900_v17, %v8450_v56  ;;  %v8442_v41 = vadd.f32 %v8441_v23, %v8360_v58 }
 0x504   : > { %v8526_v60 = vpop.f32.mrf.mxu0 }
 0x505   : > { %v8612_v40 = vadd.f32 %v9907_v0, %v8533_v1  ;;  %v8527_v24 = vadd.f32 %v8526_v60, %v8442_v41 }
 0x507   : > { %v8616_v46 = vsub.f32 %v8110_v42, %v8612_v40  ;;  %v8606_v32 = vadd.f32 %v8605_v51, %v8527_v24 }
 0x509   : > { %8841 = vst.msk [vmem:[%s11554_s14 + $0x18] sm:$0xff] %vm513_vm0, %v8616_v46  ;;  %v8615_v61 = vsub.f32 %v8104_v6, %v8606_v32 }
 0x50b   : > { %8840 = vst.msk [vmem:[%s11554_s14 + $0x10] sm:$0xff] %vm513_vm0, %v8615_v61 }
 0x50c   : > { %10247 = shalt.err (!%p10244_p5)
}
 0x50d   : > { %s10248_s20 = scalar_lea.hbm %s11567_s15, 512  ;;  %s10252_s24 = scalar_lea.hbm %s11746_s23, 1024 }
 0x50e   : > { %p10249_p9 = scmp.ne.s32.totalorder %s11567_s15, %s10248_s20  ;;  %p10253_p4 = scmp.lt.s32.totalorder %s11567_s15, %s11746_s23 }
 0x50f   : > { %p10254_p2 = scmp.lt.s32.totalorder %s10252_s24, %s10248_s20 }
 0x510   : > { %p10250_p13 = pnand %p10249_p9, %p11747_p12 }
 0x511   : > { %p10255_p6 = por %p10254_p2, %p10253_p4 }
 0x512   : > { %p10251_p1 = pneg %p10250_p13 }
 0x514   : > { %p10256_p11 = pnand %p10255_p6, %p10251_p1 }
 0x516   : > { %10259 = shalt.err (!%p10256_p11)
}
 0x517   : > { %s10323_s12 = smov 128   ;;  %s10324_s27 = smov 8  }
 0x518   : > { %9932 = dma.vmem_to_hbm [thread:$0]  (%p11747_p12), %s11562_s22, 512, %s11567_s15, %s8621_s9, %s10323_s12, %s10323_s12, %s10324_s27  }
 0x519 PF: > { %s11748_s10 = sld [smem:[#allocation20_spill]] }
 0x51a   : > { %s11749_s11 = sld [smem:[#allocation23_spill]] }
 0x51b   : > { %s11750_s14 = sld [smem:[#allocation22_spill]] }
 0x51f   : > { %s8649_s30 = sand.u32 1, %s11748_s10  }
 0x520   : > { %p11751_p7 = scmp.ne.s32.totalorder %s11749_s11, 0  ;;  %s8650_s4 = scalar_lea.sflag [#allocation4], %s8649_s30 }
 0x521   : > { %p11752_p0 = scmp.ge.s32.totalorder %s11750_s14, 2 }
 0x523   : > { %p9961_p8 = pnand %p11752_p0, %p11751_p7 }
 0x525   : > { %p9962_p3 = pneg %p9961_p8 }
 0x527   : > { %10293 = dma.done.wait (%p9962_p3), %s8650_s4, 512  }
 0x528   : > { %10295 = vsyncadd (%p9962_p3), %s8650_s4, 4294966784  ;;  %s11753_s30 = sld [smem:[#allocation24_spill]]  ;;  %s11756_s27 = smov %s10302_s28 }
 0x529   : > { %s11754_s16 = sld [smem:[#allocation21_spill]] }
 0x52a   : > { %s11755_s29 = sld [smem:[#allocation25_spill]] }
 0x52e   : > { %p21_p10 = scmp.ge.s32.totalorder %s11753_s30, 4  }
 0x52f   : > { %s11757_s28 = smov %s11754_s16 }
 0x530   :  { %23 = sbr.rel (!%p21_p10) target bundleno = 10 (0xa), region = 149 }
 0x535   :  { %8655 = vsyncpa [#allocation3], 1 }
 0x536   :  { %8657 = vsyncpa [#allocation3 + $0x1], 1 }
 0x537   :  { %8658 = vsyncpa [#allocation6], 1 }
 0x538   :  { %8659 = vsyncpa [#allocation9], 1 }
 0x539   :  { %8660 = vsyncpa [#allocation4], 1 }
 0x53a   :  { %8662 = vsyncpa [#allocation4 + $0x1], 1 }

</bundles_post_ra>
